<compile_context>
chip_gen: v7x
topology: tpu7x:2x2x1
jax: 0.10.0
libtpu: 0.0.40
codegen_flags: <defaults>
</compile_context>

<pallas_src>
import jax
import jax.numpy as jnp
from jax.experimental import pallas as pl
from jax.experimental.pallas import tpu as pltpu


def residual_block_enhance_pallas(x, params, dilation=1):
    """x: (B, C, H, W) float32 NCHW (like the PyTorch module).

    params:
      w1   : (3, 3, Cin, Cout)   conv1 weight, tap-major, channels-last per tap
      w2   : (3, 3, Cout, Cout)  conv2 weight
      wfc1 : (Cout, Ch)          SE fc1 weight (== fc1.weight.T in PyTorch)
      wfc2 : (Cout, Ch)          SE fc2 weight (== fc2.weight  in PyTorch)
    """
    w1, w2, wfc1, wfc2 = params
    B, Cin, H, W = x.shape
    Cout = w1.shape[-1]
    Ch = wfc1.shape[-1]
    assert Cin == Cout, "residual add requires in_num == out_num"
    d = dilation
    HW = H * W

    # Flat channel-first staging buffer layout (lanes):
    #   [0, base)          zeros  (top halo; base is 128-aligned so the interior
    #                              store below is a lane-aligned unmasked slab)
    #   [base, base+HW)    image rows, row-major (W-stride)
    #   [base+HW, Nv)      zeros  (bottom halo)
    # Tap (ky,kx) of the dilated 3x3 conv is the single contiguous lane slice at
    # static offset base + (ky-1)*d*W + (kx-1)*d.  Vertical out-of-bounds reads
    # land in the zero halos; horizontal out-of-bounds is killed by column masks.
    halo = d * W + d
    base = ((halo + 127) // 128) * 128
    Nv = base + HW + halo

    x_id = x.reshape(B, Cin, HW)                                    # free reshape (NCHW)
    # per-tap channel-first conv weights: (9, Cout, Cin), tap-major (ky, kx)
    w1_cf = jnp.transpose(w1.reshape(9, Cin, Cout), (0, 2, 1))
    w2_cf = jnp.transpose(w2.reshape(9, Cout, Cout), (0, 2, 1))

    def kernel(x_ref, w1_ref, w2_ref, wfc1_ref, wfc2_ref, out_ref, xv_ref, h1v_ref):
        f32 = jnp.float32
        # column masks folding the horizontal zero-padding into the tap sums
        xpos = jax.lax.broadcasted_iota(jnp.int32, (1, HW), 1) % W
        m_left = (xpos >= d).astype(f32)         # zeroes kx=0 taps at x <  d
        m_right = (xpos < W - d).astype(f32)     # zeroes kx=2 taps at x >= W-d

        def conv3x3(w_ref, src_ref):
            acc = None
            for ky in range(3):
                for kx in range(3):
                    t = 3 * ky + kx
                    off = base + (ky - 1) * d * W + (kx - 1) * d
                    tap = src_ref[:, off:off + HW]                  # (C, HW) flat slice
                    part = jnp.dot(w_ref[t], tap,
                                   preferred_element_type=f32)      # (Cout, HW)
                    if kx == 0:
                        part = part * m_left
                    elif kx == 2:
                        part = part * m_right
                    acc = part if acc is None else acc + part
            return acc

        # ---- stage x: zero only the small halos + one aligned interior store ----
        xv_ref[:, 0:base] = jnp.zeros((Cin, base), f32)
        xv_ref[:, base + HW:Nv] = jnp.zeros((Cin, Nv - base - HW), f32)
        xv_ref[:, base:base + HW] = x_ref[...]

        # ---- conv1 (dilated 3x3, no bias) + ReLU  -> (Cout, HW) channel-first ----
        h1 = jnp.maximum(conv3x3(w1_ref, xv_ref), 0.0)

        # ---- stage relu(conv1) the same way for conv2's taps ----
        h1v_ref[:, 0:base] = jnp.zeros((Cout, base), f32)
        h1v_ref[:, base + HW:Nv] = jnp.zeros((Cout, Nv - base - HW), f32)
        h1v_ref[:, base:base + HW] = h1

        # ---- conv2 (dilated 3x3, no bias)         -> (Cout, HW) ----
        h2 = conv3x3(w2_ref, h1v_ref)

        # ---- SE: GAP -> FC(C->Ch) + ReLU -> FC(Ch->C) -> sigmoid (VPU/XLU) ----
        s = jnp.mean(h2, axis=1, keepdims=True)                               # (Cout,1)
        z = jnp.maximum(jnp.sum(wfc1_ref[...] * s, axis=0, keepdims=True), 0.0)  # (1,Ch)
        pre = jnp.sum(wfc2_ref[...] * z, axis=1, keepdims=True)               # (Cout,1)
        gate = 1.0 / (1.0 + jnp.exp(-pre))                                    # sigmoid

        # ---- channel gate + residual; lane-dense store, already NCHW order ----
        out_ref[...] = h2 * gate + x_ref[...]

    out_flat = pl.pallas_call(
        kernel,
        out_shape=jax.ShapeDtypeStruct((B, Cout, HW), jnp.float32),
        grid=(B,),
        in_specs=[
            pl.BlockSpec((None, Cin, HW), lambda b: (b, 0, 0)),     # x (NCHW, flat HW)
            pl.BlockSpec((9, Cout, Cin), lambda b: (0, 0, 0)),      # conv1 taps (cf)
            pl.BlockSpec((9, Cout, Cout), lambda b: (0, 0, 0)),     # conv2 taps (cf)
            pl.BlockSpec((Cout, Ch), lambda b: (0, 0)),             # SE fc1 (= w.T)
            pl.BlockSpec((Cout, Ch), lambda b: (0, 0)),             # SE fc2 (= w)
        ],
        out_specs=pl.BlockSpec((None, Cout, HW), lambda b: (b, 0, 0)),
        scratch_shapes=[pltpu.VMEM((Cin, Nv), jnp.float32),
                        pltpu.VMEM((Cout, Nv), jnp.float32)],
        compiler_params=pltpu.CompilerParams(
            dimension_semantics=("parallel",)),
    )(x_id, w1_cf, w2_cf, wfc1, wfc2)

    # already channel-first: free reshape back to NCHW, no transpose
    return out_flat.reshape(B, Cout, H, W)


def residual_block_enhance_ref(x, params, dilation=1):
    """Pure-JAX reference mirroring the PyTorch forward exactly (NCHW)."""
    w1, w2, wfc1, wfc2 = params
    d = dilation

    def conv3x3(inp, w):
        w_oihw = jnp.transpose(w, (3, 2, 0, 1))          # (Cout, Cin, 3, 3)
        return jax.lax.conv_general_dilated(
            inp, w_oihw, window_strides=(1, 1),
            padding=((d, d), (d, d)), rhs_dilation=(d, d),
            dimension_numbers=('NCHW', 'OIHW', 'NCHW'),
            precision=jax.lax.Precision.HIGHEST)

    out = jax.nn.relu(conv3x3(x, w1))
    out = conv3x3(out, w2)
    s = jnp.mean(out, axis=(2, 3))                                          # (B, C)
    z = jax.nn.relu(jnp.dot(s, wfc1, precision=jax.lax.Precision.HIGHEST))  # (B, Ch)
    gate = jax.nn.sigmoid(
        jnp.dot(z, wfc2.T, precision=jax.lax.Precision.HIGHEST))            # (B, C)
    se = out * gate[:, :, None, None]
    return se + x


if __name__ == "__main__":
    # channel must be >= reduction (=16) so the SE hidden dim is >= 1, and the
    # residual add requires in_num == out_num.
    B, C, H, W = 2, 32, 16, 16
    dilation = 2
    reduction = 16
    Ch = C // reduction

    key = jax.random.PRNGKey(0)
    ks = jax.random.split(key, 5)
    x = jax.random.normal(ks[0], (B, C, H, W), dtype=jnp.float32)

    # deterministic synthetic parameters
    w1 = 0.1 * jax.random.normal(ks[1], (3, 3, C, C), dtype=jnp.float32)    # conv1
    w2 = 0.1 * jax.random.normal(ks[2], (3, 3, C, C), dtype=jnp.float32)    # conv2
    wfc1 = 0.5 * jax.random.normal(ks[3], (C, Ch), dtype=jnp.float32)       # SE fc1 (= weight.T)
    wfc2 = 0.5 * jax.random.normal(ks[4], (C, Ch), dtype=jnp.float32)       # SE fc2 (= weight)
    params = (w1, w2, wfc1, wfc2)

    out = residual_block_enhance_pallas(x, params, dilation=dilation)
    out = jax.block_until_ready(out)

    ref = residual_block_enhance_ref(x, params, dilation=dilation)
    assert out.shape == (B, C, H, W), out.shape
    max_err = float(jnp.max(jnp.abs(out - ref)))
    assert jnp.allclose(out, ref, rtol=1e-3, atol=1e-3), max_err

    print("KERNEL_OK")
</pallas_src>

<mosaic_0001>
module attributes {stable_mosaic.version = 11 : i64} {
  func.func @kernel(%arg0: i32, %arg1: memref<1x32x256xf32, #tpu.memory_space<vmem>>, %arg2: memref<9x32x32xf32, #tpu.memory_space<vmem>>, %arg3: memref<9x32x32xf32, #tpu.memory_space<vmem>>, %arg4: memref<32x2xf32, #tpu.memory_space<vmem>>, %arg5: memref<32x2xf32, #tpu.memory_space<vmem>>, %arg6: memref<1x32x256xf32, #tpu.memory_space<vmem>>, %arg7: memref<32x418xf32, #tpu.memory_space<vmem>>, %arg8: memref<32x418xf32, #tpu.memory_space<vmem>>) attributes {dimension_semantics = [#tpu.dimension_semantics<parallel>], iteration_bounds = array<i64: 2>, scalar_prefetch = 0 : i64, scratch_operands = 2 : i64, tpu.core_type = #tpu.core_type<tc>, window_params = [{transform_indices = @transform_0, window_bounds = array<i64: 1, 32, 256>}, {pipeline_mode = #tpu.pipeline_mode<synchronous>, transform_indices = @transform_1, window_bounds = array<i64: 9, 32, 32>}, {pipeline_mode = #tpu.pipeline_mode<synchronous>, transform_indices = @transform_2, window_bounds = array<i64: 9, 32, 32>}, {pipeline_mode = #tpu.pipeline_mode<synchronous>, transform_indices = @transform_3, window_bounds = array<i64: 32, 2>}, {pipeline_mode = #tpu.pipeline_mode<synchronous>, transform_indices = @transform_4, window_bounds = array<i64: 32, 2>}, {transform_indices = @transform_5, window_bounds = array<i64: 1, 32, 256>}]} {
    %0 = tpu.iota {dimensions = array<i32: 1>} : vector<1x256xi32>
    %c16_i32 = arith.constant 16 : i32
    %c0_i32 = arith.constant 0 : i32
    %1 = arith.cmpi eq, %c16_i32, %c0_i32 : i32
    %c1_i32 = arith.constant 1 : i32
    %2 = arith.select %1, %c1_i32, %c16_i32 : i32
    %3 = vector.broadcast %2 : i32 to vector<1x256xi32>
    %4 = arith.remsi %0, %3 : vector<1x256xi32>
    %c0_i32_0 = arith.constant 0 : i32
    %5 = vector.broadcast %c0_i32_0 : i32 to vector<1x256xi32>
    %6 = arith.cmpi ne, %4, %5 : vector<1x256xi32>
    %c0_i32_1 = arith.constant 0 : i32
    %7 = vector.broadcast %c0_i32_1 : i32 to vector<1x256xi32>
    %8 = arith.cmpi slt, %4, %7 : vector<1x256xi32>
    %c0_i32_2 = arith.constant 0 : i32
    %9 = arith.cmpi slt, %2, %c0_i32_2 : i32
    %10 = vector.broadcast %9 : i1 to vector<1x256xi1>
    %11 = vector.broadcast %10 : vector<1x256xi1> to vector<1x256xi1>
    %12 = arith.xori %8, %11 : vector<1x256xi1>
    %13 = arith.andi %12, %6 : vector<1x256xi1>
    %14 = vector.broadcast %2 : i32 to vector<1x256xi32>
    %15 = arith.addi %4, %14 : vector<1x256xi32>
    %16 = arith.select %13, %15, %4 : vector<1x256xi1>, vector<1x256xi32>
    %c2_i32 = arith.constant 2 : i32
    %17 = vector.broadcast %c2_i32 : i32 to vector<1x256xi32>
    %18 = arith.cmpi sge, %16, %17 : vector<1x256xi32>
    %19 = arith.extui %18 : vector<1x256xi1> to vector<1x256xi32>
    %20 = arith.sitofp %19 : vector<1x256xi32> to vector<1x256xf32>
    %c14_i32 = arith.constant 14 : i32
    %21 = vector.broadcast %c14_i32 : i32 to vector<1x256xi32>
    %22 = arith.cmpi slt, %16, %21 : vector<1x256xi32>
    %23 = arith.extui %22 : vector<1x256xi1> to vector<1x256xi32>
    %24 = arith.sitofp %23 : vector<1x256xi32> to vector<1x256xf32>
    %cst = arith.constant 0.000000e+00 : f32
    %25 = vector.broadcast %cst : f32 to vector<32x128xf32>
    %c0 = arith.constant 0 : index
    %c0_3 = arith.constant 0 : index
    %26 = vector.load %arg7[%c0, %c0_3] : memref<32x418xf32, #tpu.memory_space<vmem>>, vector<32x128xf32>
    tpu.vector_store %arg7[%c0, %c0_3], %25 {strides = array<i32>} : memref<32x418xf32, #tpu.memory_space<vmem>>, vector<32x128xf32>,
    %cst_4 = arith.constant 0.000000e+00 : f32
    %27 = vector.broadcast %cst_4 : f32 to vector<32x34xf32>
    %c0_5 = arith.constant 0 : index
    %c384 = arith.constant 384 : index
    %28 = vector.load %arg7[%c0_5, %c384] : memref<32x418xf32, #tpu.memory_space<vmem>>, vector<32x34xf32>
    tpu.vector_store %arg7[%c0_5, %c384], %27 {strides = array<i32>} : memref<32x418xf32, #tpu.memory_space<vmem>>, vector<32x34xf32>,
    %c0_6 = arith.constant 0 : index
    %c0_7 = arith.constant 0 : index
    %c0_8 = arith.constant 0 : index
    %29 = vector.load %arg1[%c0_6, %c0_7, %c0_8] : memref<1x32x256xf32, #tpu.memory_space<vmem>>, vector<1x32x256xf32>
    %30 = vector.shape_cast %29 : vector<1x32x256xf32> to vector<32x256xf32>
    %c0_9 = arith.constant 0 : index
    %c128 = arith.constant 128 : index
    %31 = vector.load %arg7[%c0_9, %c128] : memref<32x418xf32, #tpu.memory_space<vmem>>, vector<32x256xf32>
    tpu.vector_store %arg7[%c0_9, %c128], %30 {strides = array<i32>} : memref<32x418xf32, #tpu.memory_space<vmem>>, vector<32x256xf32>,
    %c0_10 = arith.constant 0 : index
    %c94 = arith.constant 94 : index
    %32 = vector.load %arg7[%c0_10, %c94] : memref<32x418xf32, #tpu.memory_space<vmem>>, vector<32x256xf32>
    %c0_11 = arith.constant 0 : index
    %c0_12 = arith.constant 0 : index
    %c0_13 = arith.constant 0 : index
    %33 = vector.load %arg2[%c0_11, %c0_12, %c0_13] : memref<9x32x32xf32, #tpu.memory_space<vmem>>, vector<1x32x32xf32>
    %34 = vector.shape_cast %33 : vector<1x32x32xf32> to vector<32x32xf32>
    %cst_14 = arith.constant dense<0.000000e+00> : vector<32x256xf32>
    %35 = tpu.matmul %34, %32, %cst_14 {dimension_numbers = #tpu.dot_dimension_numbers<[1], [0], [0], [1], [0, 0, 1, 1], [], []>} : vector<32x32xf32>, vector<32x256xf32>, vector<32x256xf32> -> vector<32x256xf32>
    %36 = vector.broadcast %20 : vector<1x256xf32> to vector<32x256xf32>
    %37 = arith.mulf %35, %36 : vector<32x256xf32>
    %c0_15 = arith.constant 0 : index
    %c96 = arith.constant 96 : index
    %38 = vector.load %arg7[%c0_15, %c96] : memref<32x418xf32, #tpu.memory_space<vmem>>, vector<32x256xf32>
    %c1 = arith.constant 1 : index
    %c0_16 = arith.constant 0 : index
    %c0_17 = arith.constant 0 : index
    %39 = vector.load %arg2[%c1, %c0_16, %c0_17] : memref<9x32x32xf32, #tpu.memory_space<vmem>>, vector<1x32x32xf32>
    %40 = vector.shape_cast %39 : vector<1x32x32xf32> to vector<32x32xf32>
    %cst_18 = arith.constant dense<0.000000e+00> : vector<32x256xf32>
    %41 = tpu.matmul %40, %38, %cst_18 {dimension_numbers = #tpu.dot_dimension_numbers<[1], [0], [0], [1], [0, 0, 1, 1], [], []>} : vector<32x32xf32>, vector<32x256xf32>, vector<32x256xf32> -> vector<32x256xf32>
    %42 = arith.addf %37, %41 : vector<32x256xf32>
    %c0_19 = arith.constant 0 : index
    %c98 = arith.constant 98 : index
    %43 = vector.load %arg7[%c0_19, %c98] : memref<32x418xf32, #tpu.memory_space<vmem>>, vector<32x256xf32>
    %c2 = arith.constant 2 : index
    %c0_20 = arith.constant 0 : index
    %c0_21 = arith.constant 0 : index
    %44 = vector.load %arg2[%c2, %c0_20, %c0_21] : memref<9x32x32xf32, #tpu.memory_space<vmem>>, vector<1x32x32xf32>
    %45 = vector.shape_cast %44 : vector<1x32x32xf32> to vector<32x32xf32>
    %cst_22 = arith.constant dense<0.000000e+00> : vector<32x256xf32>
    %46 = tpu.matmul %45, %43, %cst_22 {dimension_numbers = #tpu.dot_dimension_numbers<[1], [0], [0], [1], [0, 0, 1, 1], [], []>} : vector<32x32xf32>, vector<32x256xf32>, vector<32x256xf32> -> vector<32x256xf32>
    %47 = vector.broadcast %24 : vector<1x256xf32> to vector<32x256xf32>
    %48 = arith.mulf %46, %47 : vector<32x256xf32>
    %49 = arith.addf %42, %48 : vector<32x256xf32>
    %c0_23 = arith.constant 0 : index
    %c126 = arith.constant 126 : index
    %50 = vector.load %arg7[%c0_23, %c126] : memref<32x418xf32, #tpu.memory_space<vmem>>, vector<32x256xf32>
    %c3 = arith.constant 3 : index
    %c0_24 = arith.constant 0 : index
    %c0_25 = arith.constant 0 : index
    %51 = vector.load %arg2[%c3, %c0_24, %c0_25] : memref<9x32x32xf32, #tpu.memory_space<vmem>>, vector<1x32x32xf32>
    %52 = vector.shape_cast %51 : vector<1x32x32xf32> to vector<32x32xf32>
    %cst_26 = arith.constant dense<0.000000e+00> : vector<32x256xf32>
    %53 = tpu.matmul %52, %50, %cst_26 {dimension_numbers = #tpu.dot_dimension_numbers<[1], [0], [0], [1], [0, 0, 1, 1], [], []>} : vector<32x32xf32>, vector<32x256xf32>, vector<32x256xf32> -> vector<32x256xf32>
    %54 = vector.broadcast %20 : vector<1x256xf32> to vector<32x256xf32>
    %55 = arith.mulf %53, %54 : vector<32x256xf32>
    %56 = arith.addf %49, %55 : vector<32x256xf32>
    %c0_27 = arith.constant 0 : index
    %c128_28 = arith.constant 128 : index
    %57 = vector.load %arg7[%c0_27, %c128_28] : memref<32x418xf32, #tpu.memory_space<vmem>>, vector<32x256xf32>
    %c4 = arith.constant 4 : index
    %c0_29 = arith.constant 0 : index
    %c0_30 = arith.constant 0 : index
    %58 = vector.load %arg2[%c4, %c0_29, %c0_30] : memref<9x32x32xf32, #tpu.memory_space<vmem>>, vector<1x32x32xf32>
    %59 = vector.shape_cast %58 : vector<1x32x32xf32> to vector<32x32xf32>
    %cst_31 = arith.constant dense<0.000000e+00> : vector<32x256xf32>
    %60 = tpu.matmul %59, %57, %cst_31 {dimension_numbers = #tpu.dot_dimension_numbers<[1], [0], [0], [1], [0, 0, 1, 1], [], []>} : vector<32x32xf32>, vector<32x256xf32>, vector<32x256xf32> -> vector<32x256xf32>
    %61 = arith.addf %56, %60 : vector<32x256xf32>
    %c0_32 = arith.constant 0 : index
    %c130 = arith.constant 130 : index
    %62 = vector.load %arg7[%c0_32, %c130] : memref<32x418xf32, #tpu.memory_space<vmem>>, vector<32x256xf32>
    %c5 = arith.constant 5 : index
    %c0_33 = arith.constant 0 : index
    %c0_34 = arith.constant 0 : index
    %63 = vector.load %arg2[%c5, %c0_33, %c0_34] : memref<9x32x32xf32, #tpu.memory_space<vmem>>, vector<1x32x32xf32>
    %64 = vector.shape_cast %63 : vector<1x32x32xf32> to vector<32x32xf32>
    %cst_35 = arith.constant dense<0.000000e+00> : vector<32x256xf32>
    %65 = tpu.matmul %64, %62, %cst_35 {dimension_numbers = #tpu.dot_dimension_numbers<[1], [0], [0], [1], [0, 0, 1, 1], [], []>} : vector<32x32xf32>, vector<32x256xf32>, vector<32x256xf32> -> vector<32x256xf32>
    %66 = vector.broadcast %24 : vector<1x256xf32> to vector<32x256xf32>
    %67 = arith.mulf %65, %66 : vector<32x256xf32>
    %68 = arith.addf %61, %67 : vector<32x256xf32>
    %c0_36 = arith.constant 0 : index
    %c158 = arith.constant 158 : index
    %69 = vector.load %arg7[%c0_36, %c158] : memref<32x418xf32, #tpu.memory_space<vmem>>, vector<32x256xf32>
    %c6 = arith.constant 6 : index
    %c0_37 = arith.constant 0 : index
    %c0_38 = arith.constant 0 : index
    %70 = vector.load %arg2[%c6, %c0_37, %c0_38] : memref<9x32x32xf32, #tpu.memory_space<vmem>>, vector<1x32x32xf32>
    %71 = vector.shape_cast %70 : vector<1x32x32xf32> to vector<32x32xf32>
    %cst_39 = arith.constant dense<0.000000e+00> : vector<32x256xf32>
    %72 = tpu.matmul %71, %69, %cst_39 {dimension_numbers = #tpu.dot_dimension_numbers<[1], [0], [0], [1], [0, 0, 1, 1], [], []>} : vector<32x32xf32>, vector<32x256xf32>, vector<32x256xf32> -> vector<32x256xf32>
    %73 = vector.broadcast %20 : vector<1x256xf32> to vector<32x256xf32>
    %74 = arith.mulf %72, %73 : vector<32x256xf32>
    %75 = arith.addf %68, %74 : vector<32x256xf32>
    %c0_40 = arith.constant 0 : index
    %c160 = arith.constant 160 : index
    %76 = vector.load %arg7[%c0_40, %c160] : memref<32x418xf32, #tpu.memory_space<vmem>>, vector<32x256xf32>
    %c7 = arith.constant 7 : index
    %c0_41 = arith.constant 0 : index
    %c0_42 = arith.constant 0 : index
    %77 = vector.load %arg2[%c7, %c0_41, %c0_42] : memref<9x32x32xf32, #tpu.memory_space<vmem>>, vector<1x32x32xf32>
    %78 = vector.shape_cast %77 : vector<1x32x32xf32> to vector<32x32xf32>
    %cst_43 = arith.constant dense<0.000000e+00> : vector<32x256xf32>
    %79 = tpu.matmul %78, %76, %cst_43 {dimension_numbers = #tpu.dot_dimension_numbers<[1], [0], [0], [1], [0, 0, 1, 1], [], []>} : vector<32x32xf32>, vector<32x256xf32>, vector<32x256xf32> -> vector<32x256xf32>
    %80 = arith.addf %75, %79 : vector<32x256xf32>
    %c0_44 = arith.constant 0 : index
    %c162 = arith.constant 162 : index
    %81 = vector.load %arg7[%c0_44, %c162] : memref<32x418xf32, #tpu.memory_space<vmem>>, vector<32x256xf32>
    %c8 = arith.constant 8 : index
    %c0_45 = arith.constant 0 : index
    %c0_46 = arith.constant 0 : index
    %82 = vector.load %arg2[%c8, %c0_45, %c0_46] : memref<9x32x32xf32, #tpu.memory_space<vmem>>, vector<1x32x32xf32>
    %83 = vector.shape_cast %82 : vector<1x32x32xf32> to vector<32x32xf32>
    %cst_47 = arith.constant dense<0.000000e+00> : vector<32x256xf32>
    %84 = tpu.matmul %83, %81, %cst_47 {dimension_numbers = #tpu.dot_dimension_numbers<[1], [0], [0], [1], [0, 0, 1, 1], [], []>} : vector<32x32xf32>, vector<32x256xf32>, vector<32x256xf32> -> vector<32x256xf32>
    %85 = vector.broadcast %24 : vector<1x256xf32> to vector<32x256xf32>
    %86 = arith.mulf %84, %85 : vector<32x256xf32>
    %87 = arith.addf %80, %86 : vector<32x256xf32>
    %cst_48 = arith.constant 0.000000e+00 : f32
    %88 = vector.broadcast %cst_48 : f32 to vector<32x256xf32>
    %89 = arith.maximumf %87, %88 : vector<32x256xf32>
    %cst_49 = arith.constant 0.000000e+00 : f32
    %90 = vector.broadcast %cst_49 : f32 to vector<32x128xf32>
    %c0_50 = arith.constant 0 : index
    %c0_51 = arith.constant 0 : index
    %91 = vector.load %arg8[%c0_50, %c0_51] : memref<32x418xf32, #tpu.memory_space<vmem>>, vector<32x128xf32>
    tpu.vector_store %arg8[%c0_50, %c0_51], %90 {strides = array<i32>} : memref<32x418xf32, #tpu.memory_space<vmem>>, vector<32x128xf32>,
    %cst_52 = arith.constant 0.000000e+00 : f32
    %92 = vector.broadcast %cst_52 : f32 to vector<32x34xf32>
    %c0_53 = arith.constant 0 : index
    %c384_54 = arith.constant 384 : index
    %93 = vector.load %arg8[%c0_53, %c384_54] : memref<32x418xf32, #tpu.memory_space<vmem>>, vector<32x34xf32>
    tpu.vector_store %arg8[%c0_53, %c384_54], %92 {strides = array<i32>} : memref<32x418xf32, #tpu.memory_space<vmem>>, vector<32x34xf32>,
    %c0_55 = arith.constant 0 : index
    %c128_56 = arith.constant 128 : index
    %94 = vector.load %arg8[%c0_55, %c128_56] : memref<32x418xf32, #tpu.memory_space<vmem>>, vector<32x256xf32>
    tpu.vector_store %arg8[%c0_55, %c128_56], %89 {strides = array<i32>} : memref<32x418xf32, #tpu.memory_space<vmem>>, vector<32x256xf32>,
    %c0_57 = arith.constant 0 : index
    %c94_58 = arith.constant 94 : index
    %95 = vector.load %arg8[%c0_57, %c94_58] : memref<32x418xf32, #tpu.memory_space<vmem>>, vector<32x256xf32>
    %c0_59 = arith.constant 0 : index
    %c0_60 = arith.constant 0 : index
    %c0_61 = arith.constant 0 : index
    %96 = vector.load %arg3[%c0_59, %c0_60, %c0_61] : memref<9x32x32xf32, #tpu.memory_space<vmem>>, vector<1x32x32xf32>
    %97 = vector.shape_cast %96 : vector<1x32x32xf32> to vector<32x32xf32>
    %cst_62 = arith.constant dense<0.000000e+00> : vector<32x256xf32>
    %98 = tpu.matmul %97, %95, %cst_62 {dimension_numbers = #tpu.dot_dimension_numbers<[1], [0], [0], [1], [0, 0, 1, 1], [], []>} : vector<32x32xf32>, vector<32x256xf32>, vector<32x256xf32> -> vector<32x256xf32>
    %99 = vector.broadcast %20 : vector<1x256xf32> to vector<32x256xf32>
    %100 = arith.mulf %98, %99 : vector<32x256xf32>
    %c0_63 = arith.constant 0 : index
    %c96_64 = arith.constant 96 : index
    %101 = vector.load %arg8[%c0_63, %c96_64] : memref<32x418xf32, #tpu.memory_space<vmem>>, vector<32x256xf32>
    %c1_65 = arith.constant 1 : index
    %c0_66 = arith.constant 0 : index
    %c0_67 = arith.constant 0 : index
    %102 = vector.load %arg3[%c1_65, %c0_66, %c0_67] : memref<9x32x32xf32, #tpu.memory_space<vmem>>, vector<1x32x32xf32>
    %103 = vector.shape_cast %102 : vector<1x32x32xf32> to vector<32x32xf32>
    %cst_68 = arith.constant dense<0.000000e+00> : vector<32x256xf32>
    %104 = tpu.matmul %103, %101, %cst_68 {dimension_numbers = #tpu.dot_dimension_numbers<[1], [0], [0], [1], [0, 0, 1, 1], [], []>} : vector<32x32xf32>, vector<32x256xf32>, vector<32x256xf32> -> vector<32x256xf32>
    %105 = arith.addf %100, %104 : vector<32x256xf32>
    %c0_69 = arith.constant 0 : index
    %c98_70 = arith.constant 98 : index
    %106 = vector.load %arg8[%c0_69, %c98_70] : memref<32x418xf32, #tpu.memory_space<vmem>>, vector<32x256xf32>
    %c2_71 = arith.constant 2 : index
    %c0_72 = arith.constant 0 : index
    %c0_73 = arith.constant 0 : index
    %107 = vector.load %arg3[%c2_71, %c0_72, %c0_73] : memref<9x32x32xf32, #tpu.memory_space<vmem>>, vector<1x32x32xf32>
    %108 = vector.shape_cast %107 : vector<1x32x32xf32> to vector<32x32xf32>
    %cst_74 = arith.constant dense<0.000000e+00> : vector<32x256xf32>
    %109 = tpu.matmul %108, %106, %cst_74 {dimension_numbers = #tpu.dot_dimension_numbers<[1], [0], [0], [1], [0, 0, 1, 1], [], []>} : vector<32x32xf32>, vector<32x256xf32>, vector<32x256xf32> -> vector<32x256xf32>
    %110 = vector.broadcast %24 : vector<1x256xf32> to vector<32x256xf32>
    %111 = arith.mulf %109, %110 : vector<32x256xf32>
    %112 = arith.addf %105, %111 : vector<32x256xf32>
    %c0_75 = arith.constant 0 : index
    %c126_76 = arith.constant 126 : index
    %113 = vector.load %arg8[%c0_75, %c126_76] : memref<32x418xf32, #tpu.memory_space<vmem>>, vector<32x256xf32>
    %c3_77 = arith.constant 3 : index
    %c0_78 = arith.constant 0 : index
    %c0_79 = arith.constant 0 : index
    %114 = vector.load %arg3[%c3_77, %c0_78, %c0_79] : memref<9x32x32xf32, #tpu.memory_space<vmem>>, vector<1x32x32xf32>
    %115 = vector.shape_cast %114 : vector<1x32x32xf32> to vector<32x32xf32>
    %cst_80 = arith.constant dense<0.000000e+00> : vector<32x256xf32>
    %116 = tpu.matmul %115, %113, %cst_80 {dimension_numbers = #tpu.dot_dimension_numbers<[1], [0], [0], [1], [0, 0, 1, 1], [], []>} : vector<32x32xf32>, vector<32x256xf32>, vector<32x256xf32> -> vector<32x256xf32>
    %117 = vector.broadcast %20 : vector<1x256xf32> to vector<32x256xf32>
    %118 = arith.mulf %116, %117 : vector<32x256xf32>
    %119 = arith.addf %112, %118 : vector<32x256xf32>
    %c0_81 = arith.constant 0 : index
    %c128_82 = arith.constant 128 : index
    %120 = vector.load %arg8[%c0_81, %c128_82] : memref<32x418xf32, #tpu.memory_space<vmem>>, vector<32x256xf32>
    %c4_83 = arith.constant 4 : index
    %c0_84 = arith.constant 0 : index
    %c0_85 = arith.constant 0 : index
    %121 = vector.load %arg3[%c4_83, %c0_84, %c0_85] : memref<9x32x32xf32, #tpu.memory_space<vmem>>, vector<1x32x32xf32>
    %122 = vector.shape_cast %121 : vector<1x32x32xf32> to vector<32x32xf32>
    %cst_86 = arith.constant dense<0.000000e+00> : vector<32x256xf32>
    %123 = tpu.matmul %122, %120, %cst_86 {dimension_numbers = #tpu.dot_dimension_numbers<[1], [0], [0], [1], [0, 0, 1, 1], [], []>} : vector<32x32xf32>, vector<32x256xf32>, vector<32x256xf32> -> vector<32x256xf32>
    %124 = arith.addf %119, %123 : vector<32x256xf32>
    %c0_87 = arith.constant 0 : index
    %c130_88 = arith.constant 130 : index
    %125 = vector.load %arg8[%c0_87, %c130_88] : memref<32x418xf32, #tpu.memory_space<vmem>>, vector<32x256xf32>
    %c5_89 = arith.constant 5 : index
    %c0_90 = arith.constant 0 : index
    %c0_91 = arith.constant 0 : index
    %126 = vector.load %arg3[%c5_89, %c0_90, %c0_91] : memref<9x32x32xf32, #tpu.memory_space<vmem>>, vector<1x32x32xf32>
    %127 = vector.shape_cast %126 : vector<1x32x32xf32> to vector<32x32xf32>
    %cst_92 = arith.constant dense<0.000000e+00> : vector<32x256xf32>
    %128 = tpu.matmul %127, %125, %cst_92 {dimension_numbers = #tpu.dot_dimension_numbers<[1], [0], [0], [1], [0, 0, 1, 1], [], []>} : vector<32x32xf32>, vector<32x256xf32>, vector<32x256xf32> -> vector<32x256xf32>
    %129 = vector.broadcast %24 : vector<1x256xf32> to vector<32x256xf32>
    %130 = arith.mulf %128, %129 : vector<32x256xf32>
    %131 = arith.addf %124, %130 : vector<32x256xf32>
    %c0_93 = arith.constant 0 : index
    %c158_94 = arith.constant 158 : index
    %132 = vector.load %arg8[%c0_93, %c158_94] : memref<32x418xf32, #tpu.memory_space<vmem>>, vector<32x256xf32>
    %c6_95 = arith.constant 6 : index
    %c0_96 = arith.constant 0 : index
    %c0_97 = arith.constant 0 : index
    %133 = vector.load %arg3[%c6_95, %c0_96, %c0_97] : memref<9x32x32xf32, #tpu.memory_space<vmem>>, vector<1x32x32xf32>
    %134 = vector.shape_cast %133 : vector<1x32x32xf32> to vector<32x32xf32>
    %cst_98 = arith.constant dense<0.000000e+00> : vector<32x256xf32>
    %135 = tpu.matmul %134, %132, %cst_98 {dimension_numbers = #tpu.dot_dimension_numbers<[1], [0], [0], [1], [0, 0, 1, 1], [], []>} : vector<32x32xf32>, vector<32x256xf32>, vector<32x256xf32> -> vector<32x256xf32>
    %136 = vector.broadcast %20 : vector<1x256xf32> to vector<32x256xf32>
    %137 = arith.mulf %135, %136 : vector<32x256xf32>
    %138 = arith.addf %131, %137 : vector<32x256xf32>
    %c0_99 = arith.constant 0 : index
    %c160_100 = arith.constant 160 : index
    %139 = vector.load %arg8[%c0_99, %c160_100] : memref<32x418xf32, #tpu.memory_space<vmem>>, vector<32x256xf32>
    %c7_101 = arith.constant 7 : index
    %c0_102 = arith.constant 0 : index
    %c0_103 = arith.constant 0 : index
    %140 = vector.load %arg3[%c7_101, %c0_102, %c0_103] : memref<9x32x32xf32, #tpu.memory_space<vmem>>, vector<1x32x32xf32>
    %141 = vector.shape_cast %140 : vector<1x32x32xf32> to vector<32x32xf32>
    %cst_104 = arith.constant dense<0.000000e+00> : vector<32x256xf32>
    %142 = tpu.matmul %141, %139, %cst_104 {dimension_numbers = #tpu.dot_dimension_numbers<[1], [0], [0], [1], [0, 0, 1, 1], [], []>} : vector<32x32xf32>, vector<32x256xf32>, vector<32x256xf32> -> vector<32x256xf32>
    %143 = arith.addf %138, %142 : vector<32x256xf32>
    %c0_105 = arith.constant 0 : index
    %c162_106 = arith.constant 162 : index
    %144 = vector.load %arg8[%c0_105, %c162_106] : memref<32x418xf32, #tpu.memory_space<vmem>>, vector<32x256xf32>
    %c8_107 = arith.constant 8 : index
    %c0_108 = arith.constant 0 : index
    %c0_109 = arith.constant 0 : index
    %145 = vector.load %arg3[%c8_107, %c0_108, %c0_109] : memref<9x32x32xf32, #tpu.memory_space<vmem>>, vector<1x32x32xf32>
    %146 = vector.shape_cast %145 : vector<1x32x32xf32> to vector<32x32xf32>
    %cst_110 = arith.constant dense<0.000000e+00> : vector<32x256xf32>
    %147 = tpu.matmul %146, %144, %cst_110 {dimension_numbers = #tpu.dot_dimension_numbers<[1], [0], [0], [1], [0, 0, 1, 1], [], []>} : vector<32x32xf32>, vector<32x256xf32>, vector<32x256xf32> -> vector<32x256xf32>
    %148 = vector.broadcast %24 : vector<1x256xf32> to vector<32x256xf32>
    %149 = arith.mulf %147, %148 : vector<32x256xf32>
    %150 = arith.addf %143, %149 : vector<32x256xf32>
    %cst_111 = arith.constant dense<0.000000e+00> : vector<32xf32>
    %151 = vector.multi_reduction <add>, %150, %cst_111 [1] : vector<32x256xf32> to vector<32xf32>
    %152 = vector.shape_cast %151 : vector<32xf32> to vector<32x1xf32>
    %cst_112 = arith.constant 2.560000e+02 : f32
    %153 = vector.broadcast %cst_112 : f32 to vector<32x1xf32>
    %154 = arith.divf %152, %153 : vector<32x1xf32>
    %c0_113 = arith.constant 0 : index
    %c0_114 = arith.constant 0 : index
    %155 = vector.load %arg4[%c0_113, %c0_114] : memref<32x2xf32, #tpu.memory_space<vmem>>, vector<32x2xf32>
    %156 = vector.broadcast %154 : vector<32x1xf32> to vector<32x2xf32>
    %157 = arith.mulf %155, %156 : vector<32x2xf32>
    %cst_115 = arith.constant dense<0.000000e+00> : vector<2xf32>
    %158 = vector.multi_reduction <add>, %157, %cst_115 [0] : vector<32x2xf32> to vector<2xf32>
    %159 = vector.shape_cast %158 : vector<2xf32> to vector<1x2xf32>
    %cst_116 = arith.constant 0.000000e+00 : f32
    %160 = vector.broadcast %cst_116 : f32 to vector<1x2xf32>
    %161 = arith.maximumf %159, %160 : vector<1x2xf32>
    %c0_117 = arith.constant 0 : index
    %c0_118 = arith.constant 0 : index
    %162 = vector.load %arg5[%c0_117, %c0_118] : memref<32x2xf32, #tpu.memory_space<vmem>>, vector<32x2xf32>
    %163 = vector.broadcast %161 : vector<1x2xf32> to vector<32x2xf32>
    %164 = arith.mulf %162, %163 : vector<32x2xf32>
    %cst_119 = arith.constant dense<0.000000e+00> : vector<32xf32>
    %165 = vector.multi_reduction <add>, %164, %cst_119 [1] : vector<32x2xf32> to vector<32xf32>
    %166 = vector.shape_cast %165 : vector<32xf32> to vector<32x1xf32>
    %cst_120 = arith.constant 0.000000e+00 : f32
    %167 = vector.broadcast %cst_120 : f32 to vector<32x1xf32>
    %168 = arith.subf %167, %166 : vector<32x1xf32>
    %169 = math.exp %168 : vector<32x1xf32>
    %cst_121 = arith.constant 1.000000e+00 : f32
    %170 = vector.broadcast %cst_121 : f32 to vector<32x1xf32>
    %171 = arith.addf %170, %169 : vector<32x1xf32>
    %cst_122 = arith.constant 1.000000e+00 : f32
    %172 = vector.broadcast %cst_122 : f32 to vector<32x1xf32>
    %173 = arith.divf %172, %171 : vector<32x1xf32>
    %174 = vector.broadcast %173 : vector<32x1xf32> to vector<32x256xf32>
    %175 = arith.mulf %150, %174 : vector<32x256xf32>
    %c0_123 = arith.constant 0 : index
    %c0_124 = arith.constant 0 : index
    %c0_125 = arith.constant 0 : index
    %176 = vector.load %arg1[%c0_123, %c0_124, %c0_125] : memref<1x32x256xf32, #tpu.memory_space<vmem>>, vector<1x32x256xf32>
    %177 = vector.shape_cast %176 : vector<1x32x256xf32> to vector<32x256xf32>
    %178 = arith.addf %175, %177 : vector<32x256xf32>
    %c0_126 = arith.constant 0 : index
    %c0_127 = arith.constant 0 : index
    %c0_128 = arith.constant 0 : index
    %179 = vector.load %arg6[%c0_126, %c0_127, %c0_128] : memref<1x32x256xf32, #tpu.memory_space<vmem>>, vector<1x32x256xf32>
    %180 = vector.shape_cast %179 : vector<1x32x256xf32> to vector<32x256xf32>
    %181 = vector.shape_cast %178 : vector<32x256xf32> to vector<1x32x256xf32>
    tpu.vector_store %arg6[%c0_126, %c0_127, %c0_128], %181 {strides = array<i32>} : memref<1x32x256xf32, #tpu.memory_space<vmem>>, vector<1x32x256xf32>,
    return
  }
  func.func @transform_0(%arg0: i32) -> (i32, i32, i32) {
    %c0_i32 = arith.constant 0 : i32
    %c0_i32_0 = arith.constant 0 : i32
    %c0_i32_1 = arith.constant 0 : i32
    return %arg0, %c0_i32, %c0_i32_0 : i32, i32, i32
  }
  func.func @transform_1(%arg0: i32) -> (i32, i32, i32) {
    %c0_i32 = arith.constant 0 : i32
    %c0_i32_0 = arith.constant 0 : i32
    %c0_i32_1 = arith.constant 0 : i32
    %c0_i32_2 = arith.constant 0 : i32
    return %c0_i32, %c0_i32_0, %c0_i32_1 : i32, i32, i32
  }
  func.func @transform_2(%arg0: i32) -> (i32, i32, i32) {
    %c0_i32 = arith.constant 0 : i32
    %c0_i32_0 = arith.constant 0 : i32
    %c0_i32_1 = arith.constant 0 : i32
    %c0_i32_2 = arith.constant 0 : i32
    return %c0_i32, %c0_i32_0, %c0_i32_1 : i32, i32, i32
  }
  func.func @transform_3(%arg0: i32) -> (i32, i32) {
    %c0_i32 = arith.constant 0 : i32
    %c0_i32_0 = arith.constant 0 : i32
    %c0_i32_1 = arith.constant 0 : i32
    return %c0_i32, %c0_i32_0 : i32, i32
  }
  func.func @transform_4(%arg0: i32) -> (i32, i32) {
    %c0_i32 = arith.constant 0 : i32
    %c0_i32_0 = arith.constant 0 : i32
    %c0_i32_1 = arith.constant 0 : i32
    return %c0_i32, %c0_i32_0 : i32, i32
  }
  func.func @transform_5(%arg0: i32) -> (i32, i32, i32) {
    %c0_i32 = arith.constant 0 : i32
    %c0_i32_0 = arith.constant 0 : i32
    %c0_i32_1 = arith.constant 0 : i32
    return %arg0, %c0_i32, %c0_i32_0 : i32, i32, i32
  }
}

</mosaic_0001>

<bundles_post_ra>
// kernel: tpu_custom_call.1
= control target key start
LH: loop header
LB: loop body
LE: loop exit
PB: predicated region body
PF: predicated region fallthrough
CT: control target
= control target key end

     0   :  { %10 = vsyncpa [#allocation5], 0  ;;  %s5588_s0 = inlined_call_operand.hbm [shape: f32[2,32,256], index: 0, kind: input, shape index: {}]   ;;  %s5589_s1 = inlined_call_operand.hbm [shape: f32[9,32,32], index: 1, kind: input, shape index: {}]   ;;  %s5590_s2 = inlined_call_operand.hbm [shape: f32[9,32,32], index: 2, kind: input, shape index: {}]   ;;  %s5591_s3 = inlined_call_operand.vmem [shape: f32[32,2], index: 3, kind: input, shape index: {}]   ;;  %s5592_s4 = inlined_call_operand.vmem [shape: f32[32,2], index: 4, kind: input, shape index: {}]   ;;  %s5593_s5 = inlined_call_operand.hbm [shape: f32[2,32,256], index: 5, kind: output, shape index: {}]  }
   0x1   :  { %12 = vsyncpa [#allocation5 + $0x1], 0 }
   0x2   :  { %13 = vsyncpa [#allocation8], 0 }
   0x3   :  { %14 = vsyncpa [#allocation6], 0 }
   0x4   :  { %16 = vsyncpa [#allocation6 + $0x1], 0  ;;  %s4593_s18 = smov 0   ;;  %s4595_s19 = smov 0  }
   0x5   :  { %s4597_s20 = smov 0   ;;  %s4599_s21 = smov 0  }
   0x6 LB: > { %s4614_s22 = sadd.s32 4294967295, %s4542_s21   ;;  %s3454_s23 = sadd.s32 4294967294, %s4542_s21   ;;  %s4542_s21 = sphi %s4599_s21, %s5613_s21   ;;  %s4538_s20 = sphi %s4597_s20, %s5612_s20   ;;  %s4534_s19 = sphi %s4595_s19, %s5611_s19   ;;  %s4530_s18 = sphi %s4593_s18, %s5610_s18  }
   0x7   : > { %p42_p0 = scmp.ne.s32.totalorder %s4534_s19, %s4530_s18  ;;  %p5594_p1 = scmp.eq.s32.totalorder %s4614_s22, 0 }
   0x8   : > { %p156_p3 = scmp.eq.s32.totalorder %s3454_s23, 1  ;;  %p3455_p5 = scmp.ge.s32.totalorder %s4542_s21, 1 }
   0x9   : > { %p4623_p4 = por %p5594_p1, %p42_p0  ;;  %p163_p7 = scmp.lt.s32.totalorder %s4542_s21, 3 }
   0xa   : > { %p4628_p6 = por %p156_p3, %p42_p0  ;;  %s4544_s27 = smov [#allocation7]  }
   0xb   : > { %s5597_s24 = scalar_select %p4623_p4, 1, 0 }
   0xc   : > { %s5598_s25 = scalar_select %p4628_p6, 1, 0 }
   0xd   : > { %p4633_p8 = pnand %p3455_p5, %p163_p7  ;;  %s175_s28 = sshll.u32 %s4544_s27, 4  ;;  %s4637_s28 = int_to_ptr.vmem [resolvable:$true] %s175_s28 }
   0xe   : > { %s4545_s30 = smov [#allocation9]   ;;  %s4386_s9 = scalar_lea.hbm %s5589_s1, 4608 }
   0xf   : > { %p3818_p9 = pneg %p4633_p8  ;;  %s188_s6 = sshll.u32 %s4545_s30, 4  ;;  %s4648_s6 = int_to_ptr.vmem [resolvable:$true] %s188_s6 }
  0x10   : > { %p4387_p12 = scmp.ne.s32.totalorder %s5589_s1, %s4386_s9  ;;  %p4393_p5 = scmp.lt.u32.totalorder %s4386_s9, %s5589_s1 }
  0x11   : > { %p4644_p11 = pnand %p3818_p9, %p5594_p1 }
  0x13   : > { %p4388_p13 = pneg %p4644_p11 }
  0x15   : > { %p4389_p0 = pnand %p4388_p13, %p4387_p12 }
  0x17   : > { %p4390_p3 = pneg %p4389_p0 }
  0x19   : > { %p4395_p7 = pnand %p4393_p5, %p4390_p3 }
  0x1b   : > { %4398 = shalt.err (!%p4395_p7)
}
  0x1c   : > { %s4399_s14 = scalar_lea.vmem %s4637_s28, 4608  ;;  %p4407_p2 = scmp.lt.s32.totalorder %s4637_s28, %s4637_s28 }
  0x1d   : > { %p4400_p9 = scmp.ne.s32.totalorder %s4637_s28, %s4399_s14  ;;  %p4408_p12 = scmp.lt.s32.totalorder %s4399_s14, %s4399_s14 }
  0x1f   : > { %p4402_p10 = pnand %p4400_p9, %p4388_p13  ;;  %p4409_p0 = por %p4408_p12, %p4407_p2 }
  0x21   : > { %p4403_p1 = pneg %p4402_p10 }
  0x23   : > { %p4410_p6 = pnand %p4409_p0, %p4403_p1 }
  0x25   : > { %4413 = shalt.err (!%p4410_p6)
}
  0x26   : > { %s4546_s15 = smov 128   ;;  %s4547_s16 = smov 8  }
  0x27   : > { %3821 = dma.hbm_to_vmem [thread:$0]  (!%p4644_p11), %s5589_s1, 4608, %s4637_s28, [#allocation8], %s4546_s15, %s4546_s15, %s4547_s16  }
  0x28   : > { %s4414_s7 = scalar_lea.hbm %s5590_s2, 4608 }
  0x29   : > { %p4415_p2 = scmp.ne.s32.totalorder %s5590_s2, %s4414_s7  ;;  %p4421_p10 = scmp.lt.u32.totalorder %s4414_s7, %s5590_s2 }
  0x2b   : > { %p4417_p1 = pnand %p4415_p2, %p4388_p13 }
  0x2d   : > { %p4418_p6 = pneg %p4417_p1 }
  0x2f   : > { %p4423_p3 = pnand %p4421_p10, %p4418_p6 }
  0x31   : > { %4426 = shalt.err (!%p4423_p3)
}
  0x32   : > { %s4427_s28 = scalar_lea.vmem %s4648_s6, 4608  ;;  %p4435_p12 = scmp.lt.s32.totalorder %s4648_s6, %s4648_s6 }
  0x33   : > { %p4428_p5 = scmp.ne.s32.totalorder %s4648_s6, %s4427_s28  ;;  %p4436_p0 = scmp.lt.s32.totalorder %s4427_s28, %s4427_s28 }
  0x35   : > { %p4430_p7 = pnand %p4428_p5, %p4388_p13  ;;  %p4437_p2 = por %p4436_p0, %p4435_p12 }
  0x37   : > { %p4431_p9 = pneg %p4430_p7 }
  0x39   : > { %p4438_p1 = pnand %p4437_p2, %p4431_p9 }
  0x3b   : > { %4441 = shalt.err (!%p4438_p1)
}
  0x3c   : > { %3824 = dma.hbm_to_vmem [thread:$0]  (!%p4644_p11), %s5590_s2, 4608, %s4648_s6, [#allocation8], %s4546_s15, %s4546_s15, %s4547_s16  }
  0x3d   : > { %s4703_s14 = sadd.s32 1, %s4542_s21   ;;  %s29_s29 = sadd.s32 1, %s4538_s20 }
  0x3e   : > { %s26_s17 = ssub.s32 %s4542_s21, %s4703_s14  ;;  %p36_p13 = scmp.ne.s32.totalorder %s4538_s20, %s4534_s19 }
  0x3f   : > { %p27_p6 = scmp.eq.s32.totalorder %s26_s17, 0  ;;  %p37_p10 = scmp.eq.s32.totalorder %s4542_s21, 0 }
  0x40   : > { %p5601_p3 = scmp.eq.s32.totalorder %s4614_s22, 1  ;;  %p3835_p7 = scmp.lt.s32.totalorder %s4542_s21, 2 }
  0x41   : > { %s4719_s27 = scalar_select %p27_p6, %s4538_s20, %s29_s29  }
  0x42   : > { %p4713_p5 = por %p5601_p3, %p36_p13  ;;  %p38_p9 = por %p37_p10, %p36_p13 }
  0x43   : > { %s208_s30 = sand.u32 1, %s4538_s20   ;;  %s3548_s6 = sshll.u32 %s4542_s21, 10 }
  0x44   : > { %s5602_s23 = scalar_select %p4713_p5, 1, 0 }
  0x45   : > { %s3459_s7 = sshll.u32 %s208_s30, 6  ;;  %s4726_s8 = scalar_lea.hbm %s5588_s0, %s3548_s6 }
  0x46   : > { %s212_s9 = scalar_lea.vmem [#allocation4], %s3459_s7  ;;  %p4730_p11 = pnand %p3835_p7, %p38_p9 }
  0x47   : > { %s219_s10 = sshll.u32 %s212_s9, 4  ;;  %s4734_s28 = scalar_lea.sflag [#allocation5], %s208_s30  ;;  %s4728_s10 = int_to_ptr.vmem [resolvable:$true] %s219_s10 }
  0x48   : > { %s4442_s12 = scalar_lea.hbm %s4726_s8, 1024  ;;  %p4444_p0 = pneg %p4730_p11 }
  0x49   : > { %p4443_p12 = scmp.ne.s32.totalorder %s4726_s8, %s4442_s12  ;;  %s4447_s17 = scalar_lea.hbm %s5588_s0, 2048 }
  0x4a   : > { %p4448_p13 = scmp.lt.u32.totalorder %s4726_s8, %s5588_s0  ;;  %p4449_p6 = scmp.lt.u32.totalorder %s4447_s17, %s4442_s12 }
  0x4b   : > { %p4445_p2 = pnand %p4444_p0, %p4443_p12  ;;  %p4451_p3 = scmp.lt.u32.totalorder %s4442_s12, %s4726_s8 }
  0x4c   : > { %p4450_p10 = por %p4449_p6, %p4448_p13 }
  0x4d   : > { %p4446_p1 = pneg %p4445_p2 }
  0x4e   : > { %p4452_p7 = por %p4451_p3, %p4450_p10 }
  0x50   : > { %p4453_p9 = pnand %p4452_p7, %p4446_p1 }
  0x52   : > { %4456 = shalt.err (!%p4453_p9)
}
  0x53   : > { %s4457_s30 = scalar_lea.vmem %s4728_s10, 1024  ;;  %s4548_s15 = smov [#allocation4]  }
  0x54   : > { %p4458_p12 = scmp.ne.s32.totalorder %s4728_s10, %s4457_s30  ;;  %s4462_s16 = sshll.u32 %s4548_s15, 4  ;;  %s4463_s16 = int_to_ptr.vmem [resolvable:$false] %s4462_s16 }
  0x55   : > { %s4464_s9 = scalar_lea.vmem %s4463_s16, 2048  ;;  %p4465_p4 = scmp.lt.s32.totalorder %s4728_s10, %s4463_s16 }
  0x56   : > { %p4460_p2 = pnand %p4458_p12, %p4444_p0  ;;  %p4466_p13 = scmp.lt.s32.totalorder %s4464_s9, %s4457_s30 }
  0x58   : > { %p4461_p5 = pneg %p4460_p2  ;;  %p4467_p6 = por %p4466_p13, %p4465_p4 }
  0x5a   : > { %p4468_p10 = pnand %p4467_p6, %p4461_p5 }
  0x5c   : > { %4471 = shalt.err (!%p4468_p10)
}
  0x5d   : > { %s4549_s12 = smov 256   ;;  %s4550_s13 = smov 16  }
  0x5e   : > { %3828 = dma.hbm_to_vmem [thread:$0]  (!%p4730_p11), %s4726_s8, 1024, %s4728_s10, %s4734_s28, %s4549_s12, %s4549_s12, %s4550_s13  }
  0x5f   : > { %231 = sbr.rel (%p4633_p8) target bundleno = 1347 (0x543), region = 40  ;;  %s4765_s29 = sand.u32 (!%p4633_p8), 1, %s4534_s19  }
  0x60   : > { %s3463_s17 = sshll.u32 (!%p4633_p8), %s4765_s29, 6  ;;  %s234_s7 = scalar_lea.sflag (!%p4633_p8), [#allocation5], %s4765_s29 }
  0x61   : > { %s4771_s6 = scalar_lea.vmem (!%p4633_p8), [#allocation4], %s3463_s17  ;;  %p5604_p4 = scmp.ne.s32.totalorder (!%p4633_p8), %s5597_s24, 0 }
  0x66   : > { %4517 = dma.done.wait (%p5604_p4), %s234_s7, 1024  }
  0x67   : > { %4519 = vsyncadd (%p5604_p4), %s234_s7, 4294966272  ;;  %p5605_p5 = scmp.eq.s32.totalorder %s4614_s22, 0 }
  0x69   : > { %4521 = dma.done.wait (%p5605_p5), [#allocation8], 9216   ;;  %p5606_p8 = pmov %p5605_p5 }
  0x6a   : > { %vm315_vm0 = vcmask 277504   ;;  %v4551_v0 = vmov 0.0   ;;  %s4552_s24 = smov 34   ;;  %v4803_v1 = vld [vmem:[%s4771_s6] sm:$0xff]  ;;  %v4806_v2 = vld [vmem:[%s4771_s6 + $0x8] sm:$0xff]  ;;  %v4811_v3 = vld [vmem:[%s4771_s6 + $0x10] sm:$0xff] }
  0x6b   : > { %4523 = vsyncadd (%p5606_p8), [#allocation8], 4294958080  ;;  %311 = vst [vmem:[#allocation2] sm:$0xff] %v4551_v0  ;;  %481 = vmatprep.mubr.f32.mxu0 %v4551_v0  ;;  %635 = vmatprep.mubr.f32.mxu1 %v4551_v0  ;;  %v3898_v4 = vpack.i.bf16 %v4806_v2, %v4803_v1  ;;  %v4816_v5 = vld [vmem:[%s4771_s6 + $0x18] sm:$0xff]  ;;  %v4819_v6 = vld [vmem:[%s4771_s6 + $0x20] sm:$0xff]  ;;  %s4553_s26 = smov 32   ;;  %v4003_v16 = vpack.i.bf16 %v4811_v3, %v4803_v1 }
  0x6c   : > { %317 = vst.msk [vmem:[#allocation2 + $0x38] sm:$0xff] %vm315_vm0, %v4551_v0  ;;  %316 = vst.msk [vmem:[#allocation2 + $0x18] sm:$0xff] %vm315_vm0, %v4551_v0  ;;  %3889 = vrot.lane.b32.xlu1 %v4551_v0, %s4552_s24  ;;  %v4822_v7 = vld [vmem:[%s4771_s6 + $0x28] sm:$0xff]  ;;  %v4827_v9 = vld [vmem:[%s4771_s6 + $0x30] sm:$0xff]  ;;  %v3903_v11 = vpack.i.bf16 %v4816_v5, %v4811_v3  ;;  %s4554_s8 = smov 30   ;;  %s4555_s10 = smov 2   ;;  %v3582_v23 = vpack.c.bf16 %v4816_v5, %v4806_v2  ;;  %v3584_v24 = vpack.c.bf16 %v4811_v3, %v4803_v1 }
  0x6d   : > { %318 = vst.msk [vmem:[#allocation2 + $0x58] sm:$0xff] %vm315_vm0, %v4551_v0  ;;  %319 = vst.msk [vmem:[#allocation2 + $0x78] sm:$0xff] %vm315_vm0, %v4551_v0  ;;  %v3908_v8 = vpack.i.bf16 %v4822_v7, %v4819_v6  ;;  %v4830_v10 = vld [vmem:[%s4771_s6 + $0x38] sm:$0xff]  ;;  %3899 = vrot.lane.b32.xlu0 %v3898_v4, %s4552_s24  ;;  %s4556_s11 = smov 126   ;;  %v4033_v21 = vpack.i.bf16 %v4827_v9, %v4819_v6  ;;  %s4557_s28 = smov 98   ;;  %v3588_v26 = vpack.c.bf16 %v4827_v9, %v4819_v6  ;;  %vm404_vm1 = vcmask 261120  }
  0x6e   : > { %1788 = vst.msk [vmem:[#allocation3 + $0x18] sm:$0xff] %vm315_vm0, %v4551_v0  ;;  %1789 = vst.msk [vmem:[#allocation3 + $0x38] sm:$0xff] %vm315_vm0, %v4551_v0  ;;  %v3913_v12 = vpack.i.bf16 %v4830_v10, %v4827_v9  ;;  %v3586_v25 = vpack.c.bf16 %v4830_v10, %v4822_v7  ;;  %s4558_s30 = smov 96   ;;  %s4559_s15 = smov 94   ;;  %vm697_vm2 = vcmask 244736   ;;  %vm860_vm3 = vcmask 15360  }
  0x6f   : > { %1790 = vst.msk [vmem:[#allocation3 + $0x58] sm:$0xff] %vm315_vm0, %v4551_v0  ;;  %1791 = vst.msk [vmem:[#allocation3 + $0x78] sm:$0xff] %vm315_vm0, %v4551_v0  ;;  %vm1161_vm4 = vcmask 1031168   ;;  %vm1324_vm5 = vcmask 801792   ;;  %vm1487_vm6 = vcmask 785408   ;;  %vm1642_vm7 = vcmask 769024  }
  0x70   : > { %3894 = vrot.lane.b32.xlu1 %v4551_v0, %s4552_s24  ;;  %v1296_v9 = vld [vmem:[#allocation7 + $0xc0] sm:$0xff]  ;;  %s3549_s13 = sshll.u32 %s4614_s22, 10  ;;  %s271_s7 = scalar_lea.vmem [#allocation10], %s3463_s17 }
  0x71   : > { %3904 = vrot.lane.b32.xlu0 %v3903_v11, %s4552_s24  ;;  %p5607_p0 = scmp.ne.s32.totalorder %s5602_s23, 0 }
  0x73   : > { %v1113_v13 = vld [vmem:[#allocation2 + $0x38] sm:$0xff] }
  0x74   : > { %3909 = vrot.lane.b32.xlu1 %v3908_v8, %s4552_s24  ;;  %v3993_v14 = vpack.i.bf16 %v1113_v13, %v4816_v5  ;;  %v1110_v15 = vld [vmem:[#allocation2 + $0x18] sm:$0xff] }
  0x75   : > { %3914 = vrot.lane.b32.xlu0 %v3913_v12, %s4552_s24  ;;  %v3988_v17 = vpack.i.bf16 %v1110_v15, %v4806_v2  ;;  %v1119_v18 = vld [vmem:[#allocation2 + $0x78] sm:$0xff] }
  0x76   : > { %v4023_v19 = vpack.i.bf16 %v1119_v18, %v4830_v10  ;;  %v1116_v20 = vld [vmem:[#allocation2 + $0x58] sm:$0xff] }
  0x77   : > { %v4018_v22 = vpack.i.bf16 %v1116_v20, %v4822_v7 }
  0x78   : > { %3924 = vrot.lane.b32.xlu1 %v3903_v11, %s4553_s26 }
  0x79   : > { %3919 = vrot.lane.b32.xlu0 %v3898_v4, %s4553_s26 }
  0x7c   : > { %3939 = vrot.lane.b32.xlu1 %v3903_v11, %s4554_s8 }
  0x7d   : > { %3929 = vrot.lane.b32.xlu0 %v3898_v4, %s4554_s8 }
  0x80   : > { %3944 = vrot.lane.b32.xlu1 %v4551_v0, %s4554_s8 }
  0x81   : > { %3934 = vrot.lane.b32.xlu0 %v4551_v0, %s4553_s26 }
  0x84   : > { %3954 = vrot.lane.b32.xlu1 %v3913_v12, %s4553_s26 }
  0x85   : > { %3949 = vrot.lane.b32.xlu0 %v3908_v8, %s4553_s26 }
  0x88   : > { %3964 = vrot.lane.b32.xlu1 %v3913_v12, %s4554_s8 }
  0x89   : > { %3959 = vrot.lane.b32.xlu0 %v3908_v8, %s4554_s8 }
  0x8c   : > { %3974 = vrot.lane.b32.xlu1 %v4551_v0, %s4554_s8 }
  0x8d   : > { %3969 = vrot.lane.b32.xlu0 %v4551_v0, %s4553_s26 }
  0x90   : > { %3984 = vrot.lane.b32.xlu1 %v3903_v11, %s4555_s10 }
  0x91   : > { %3979 = vrot.lane.b32.xlu0 %v3898_v4, %s4555_s10 }
  0x94   : > { %3994 = vrot.lane.b32.xlu1 %v3993_v14, %s4556_s11 }
  0x95   : > { %3989 = vrot.lane.b32.xlu0 %v3988_v17, %s4556_s11 }
  0x98   : > { %4004 = vrot.lane.b32.xlu1 %v4003_v16, %s4556_s11 }
  0x99   : > { %3999 = vrot.lane.b32.xlu0 %v4551_v0, %s4555_s10 }
  0x9c   : > { %4014 = vrot.lane.b32.xlu1 %v3913_v12, %s4555_s10 }
  0x9d   : > { %4009 = vrot.lane.b32.xlu0 %v3908_v8, %s4555_s10 }
  0xa0   : > { %4024 = vrot.lane.b32.xlu1 %v4023_v19, %s4556_s11 }
  0xa1   : > { %4019 = vrot.lane.b32.xlu0 %v4018_v22, %s4556_s11 }
  0xa4   : > { %4034 = vrot.lane.b32.xlu1 %v4033_v21, %s4556_s11 }
  0xa5   : > { %4029 = vrot.lane.b32.xlu0 %v4551_v0, %s4555_s10 }
  0xa8   : > { %4044 = vrot.lane.b32.xlu1 %v3993_v14, %s4557_s28 }
  0xa9   : > { %4039 = vrot.lane.b32.xlu0 %v3988_v17, %s4557_s28 }
  0xac   : > { %4054 = vrot.lane.b32.xlu1 %v4018_v22, %s4557_s28 }
  0xad   : > { %4049 = vrot.lane.b32.xlu0 %v4003_v16, %s4557_s28 }
  0xb0   : > { %4064 = vrot.lane.b32.xlu1 %v4033_v21, %s4557_s28 }
  0xb1   : > { %4059 = vrot.lane.b32.xlu0 %v4023_v19, %s4557_s28 }
  0xb4   : > { %4074 = vrot.lane.b32.xlu1 %v3993_v14, %s4558_s30 }
  0xb5   : > { %4069 = vrot.lane.b32.xlu0 %v3988_v17, %s4558_s30 }
  0xb8   : > { %4084 = vrot.lane.b32.xlu1 %v3993_v14, %s4559_s15 }
  0xb9   : > { %4079 = vrot.lane.b32.xlu0 %v3988_v17, %s4559_s15 }
  0xbc   : > { %4094 = vrot.lane.b32.xlu1 %v4003_v16, %s4559_s15 }
  0xbd   : > { %4089 = vrot.lane.b32.xlu0 %v4003_v16, %s4558_s30  ;;  %v348_v16 = vld [vmem:[#allocation7] sm:$0xff] }
  0xc0   : > { %4104 = vrot.lane.b32.xlu1 %v4023_v19, %s4558_s30 }
  0xc1   : > { %4099 = vrot.lane.b32.xlu0 %v4018_v22, %s4558_s30 }
  0xc4   : > { %4114 = vrot.lane.b32.xlu1 %v4023_v19, %s4559_s15 }
  0xc5   : > { %4109 = vrot.lane.b32.xlu0 %v4018_v22, %s4559_s15 }
  0xc8   : > { %4124 = vrot.lane.b32.xlu1 %v4033_v21, %s4559_s15 }
  0xc9   : > { %4119 = vrot.lane.b32.xlu0 %v4033_v21, %s4558_s30 }
  0xcc   : > { %4134 = vrot.lane.b32.xlu1 %v4551_v0, %s4552_s24 }
  0xcd   : > { %4129 = vrot.lane.b32.xlu0 %v4551_v0, %s4552_s24 }
  0xd0   : > { %4144 = vrot.lane.b32.xlu1 %v4551_v0, %s4554_s8 }
  0xd1   : > { %4139 = vrot.lane.b32.xlu0 %v4551_v0, %s4553_s26 }
  0xde   : > { %v3890_v27 = vpop.permute.xlu1 %3889 }
  0xdf   : > { %v3900_v29 = vpop.permute.xlu0 %3899  ;;  %v3891_v31 = vunpack.i.l.bf16 %v3890_v27  ;;  %v3892_v35 = vunpack.i.h.bf16 %v3890_v27 }
  0xe0   : > { %v3902_v32 = vunpack.i.h.bf16 %v3900_v29  ;;  %v3901_v33 = vunpack.i.l.bf16 %v3900_v29 }
  0xe2   : > { %v3895_v28 = vpop.permute.xlu1 %3894  ;;  %v389_v42 = vsel %vm315_vm0, %v3901_v33, %v3902_v32  ;;  %v388_v44 = vsel %vm315_vm0, %v3891_v31, %v3901_v33 }
  0xe3   : > { %v3905_v34 = vpop.permute.xlu0 %3904  ;;  %v3896_v40 = vunpack.i.l.bf16 %v3895_v28  ;;  %v3897_v51 = vunpack.i.h.bf16 %v3895_v28 }
  0xe4   : > { %v3907_v36 = vunpack.i.h.bf16 %v3905_v34  ;;  %v3906_v37 = vunpack.i.l.bf16 %v3905_v34 }
  0xe6   : > { %v3910_v30 = vpop.permute.xlu1 %3909  ;;  %v391_v43 = vsel %vm315_vm0, %v3906_v37, %v3907_v36  ;;  %v390_v45 = vsel %vm315_vm0, %v3892_v35, %v3906_v37 }
  0xe7   : > { %v3912_v38 = vunpack.i.h.bf16 %v3910_v30  ;;  %v3911_v41 = vunpack.i.l.bf16 %v3910_v30  ;;  %v3915_v46 = vpop.permute.xlu0 %3914  ;;  %v3550_v49 = vpack.c.bf16 %v391_v43, %v389_v42  ;;  %v3552_v50 = vpack.c.bf16 %v390_v45, %v388_v44  ;;  %v349_v30 = vld [vmem:[#allocation7 + $0x8] sm:$0xff] }
  0xe8   : > { %v3917_v52 = vunpack.i.h.bf16 %v3915_v46  ;;  %v3916_v53 = vunpack.i.l.bf16 %v3915_v46 }
  0xe9   : > { %v393_v55 = vsel %vm315_vm0, %v3911_v41, %v3912_v38  ;;  %3551 = vmatprep.subr.bf16.mxu0 %v3550_v49  ;;  %v392_v57 = vsel %vm315_vm0, %v3896_v40, %v3911_v41  ;;  %v350_v41 = vld [vmem:[#allocation7 + $0x10] sm:$0xff] }
  0xea   : > { %v4904_v39 = vpop.permute.xlu1 %3924  ;;  %3553 = vmatpush1.bf16.msra.mxu0 %v3552_v50  ;;  %v395_v56 = vsel %vm315_vm0, %v3916_v53, %v3917_v52  ;;  %v394_v58 = vsel %vm315_vm0, %v3897_v51, %v3916_v53 }
  0xeb   : > { %v3927_v47 = vunpack.i.h.bf16 %v4904_v39  ;;  %v3926_v48 = vunpack.i.l.bf16 %v4904_v39  ;;  %v3920_v59 = vpop.permute.xlu0 %3919  ;;  %v3554_v60 = vpack.c.bf16 %v395_v56, %v393_v55  ;;  %v3556_v61 = vpack.c.bf16 %v394_v58, %v392_v57 }
  0xec   : > { %v3922_v63 = vunpack.i.h.bf16 %v3920_v59  ;;  %v3921_v4 = vunpack.i.l.bf16 %v3920_v59 }
  0xed   : > { %v546_v62 = vsel %vm404_vm1, %v3926_v48, %v3927_v47  ;;  %3555 = vmatprep.subr.bf16.mxu0 %v3554_v60 }
  0xee   : > { %v3940_v54 = vpop.permute.xlu1 %3939  ;;  %3557 = vmatpush1.bf16.msra.mxu0 %v3556_v61  ;;  %v544_v15 = vsel %vm404_vm1, %v3921_v4, %v3922_v63 }
  0xef   : > { %v3942_v8 = vunpack.i.h.bf16 %v3940_v54  ;;  %v3941_v11 = vunpack.i.l.bf16 %v3940_v54  ;;  %v3930_v17 = vpop.permute.xlu0 %3929  ;;  %v3558_v18 = vpack.c.bf16 %v546_v62, %v544_v15 }
  0xf0   : > { %v3932_v19 = vunpack.i.h.bf16 %v3930_v17  ;;  %v3931_v20 = vunpack.i.l.bf16 %v3930_v17 }
  0xf1   : > { %v701_v27 = vsel %vm697_vm2, %v3941_v11, %v3942_v8  ;;  %3559 = vmatprep.subr.bf16.mxu1 %v3558_v18  ;;  %3471 = vmatmul.mubr.msk.f32.vlgmr.msra.gmra.mrb[0].mxu0 %vm404_vm1, %v348_v16  ;;  %v669_v18 = vld [vmem:[#allocation7 + $0x40] sm:$0xff] }
  0xf2   : > { %v3945_v12 = vpop.permute.xlu1 %3944  ;;  %v699_v29 = vsel %vm697_vm2, %v3931_v20, %v3932_v19  ;;  %487 = vmatprep.mubr.f32.mxu0 %v4551_v0 }
  0xf3   : > { %v3947_v13 = vunpack.i.h.bf16 %v3945_v12  ;;  %v3946_v14 = vunpack.i.l.bf16 %v3945_v12  ;;  %v3935_v32 = vpop.permute.xlu0 %3934  ;;  %v3566_v35 = vpack.c.bf16 %v701_v27, %v699_v29 }
  0xf4   : > { %v3937_v36 = vunpack.i.h.bf16 %v3935_v32  ;;  %v3936_v37 = vunpack.i.l.bf16 %v3935_v32  ;;  %v515_v32 = vld [vmem:[#allocation7 + $0x20] sm:$0xff] }
  0xf5   : > { %v700_v21 = vsel %vm697_vm2, %v3947_v13, %v3941_v11  ;;  %v698_v28 = vsel %vm697_vm2, %v3946_v14, %v3931_v20  ;;  %3567 = vmatprep.subr.bf16.mxu0 %v3566_v35  ;;  %3472 = vmatmul.mubr.msk.f32.gmra.mrb[2].mxu0 %vm404_vm1, %v349_v30 }
  0xf6   : > { %v4919_v22 = vpop.permute.xlu1 %3954  ;;  %v3568_v31 = vpack.c.bf16 %v700_v21, %v698_v28  ;;  %v543_v39 = vsel %vm404_vm1, %v3936_v37, %v3921_v4  ;;  %v545_v40 = vsel %vm404_vm1, %v3937_v36, %v3926_v48  ;;  %493 = vmatprep.mubr.f32.mxu0 %v4551_v0  ;;  %v351_v48 = vld [vmem:[#allocation7 + $0x18] sm:$0xff] }
  0xf7   : > { %v3957_v33 = vunpack.i.h.bf16 %v4919_v22  ;;  %v3956_v34 = vunpack.i.l.bf16 %v4919_v22  ;;  %v3950_v42 = vpop.permute.xlu0 %3949  ;;  %v3560_v43 = vpack.c.bf16 %v545_v40, %v543_v39 }
  0xf8   : > { %3569 = vmatpush1.bf16.msra.mxu0 %v3568_v31  ;;  %v3952_v45 = vunpack.i.h.bf16 %v3950_v42  ;;  %v3951_v46 = vunpack.i.l.bf16 %v3950_v42 }
  0xf9   : > { %v550_v44 = vsel %vm404_vm1, %v3956_v34, %v3957_v33  ;;  %3561 = vmatpush1.bf16.msra.mxu1 %v3560_v43  ;;  %3473 = vmatmul.mubr.msk.f32.gmra.mrb[4].mxu0 %vm404_vm1, %v350_v41  ;;  %v516_v43 = vld [vmem:[#allocation7 + $0x28] sm:$0xff] }
  0xfa   : > { %v3965_v38 = vpop.permute.xlu1 %3964  ;;  %v548_v53 = vsel %vm404_vm1, %v3951_v46, %v3952_v45  ;;  %499 = vmatprep.mubr.f32.mxu0 %v4551_v0  ;;  %v671_v45 = vld [vmem:[#allocation7 + $0x50] sm:$0xff] }
  0xfb   : > { %v3967_v47 = vunpack.i.h.bf16 %v3965_v38  ;;  %v3966_v49 = vunpack.i.l.bf16 %v3965_v38  ;;  %v3960_v54 = vpop.permute.xlu0 %3959  ;;  %v3562_v55 = vpack.c.bf16 %v550_v44, %v548_v53 }
  0xfc   : > { %v3962_v56 = vunpack.i.h.bf16 %v3960_v54  ;;  %v3961_v57 = vunpack.i.l.bf16 %v3960_v54 }
  0xfd   : > { %v705_v60 = vsel %vm697_vm2, %v3966_v49, %v3967_v47  ;;  %3563 = vmatprep.subr.bf16.mxu1 %v3562_v55  ;;  %3474 = vmatmul.mubr.msk.f32.gmra.mrb[6].mxu0 %vm404_vm1, %v351_v48  ;;  %v517_v55 = vld [vmem:[#allocation7 + $0x30] sm:$0xff] }
  0xfe   : > { %v3975_v50 = vpop.permute.xlu1 %3974  ;;  %v703_v62 = vsel %vm697_vm2, %v3961_v57, %v3962_v56  ;;  %790 = vmatprep.mubr.f32.mxu0 %v4551_v0 }
  0xff   : > { %v3977_v51 = vunpack.i.h.bf16 %v3975_v50  ;;  %v3976_v52 = vunpack.i.l.bf16 %v3975_v50  ;;  %v3970_v4 = vpop.permute.xlu0 %3969  ;;  %v3570_v12 = vpack.c.bf16 %v705_v60, %v703_v62 }
 0x100   : > { %v3972_v13 = vunpack.i.h.bf16 %v3970_v4  ;;  %v3971_v14 = vunpack.i.l.bf16 %v3970_v4 }
 0x101   : > { %v704_v58 = vsel %vm697_vm2, %v3977_v51, %v3966_v49  ;;  %v702_v61 = vsel %vm697_vm2, %v3976_v52, %v3961_v57  ;;  %3571 = vmatprep.subr.bf16.mxu0 %v3570_v12 }
 0x102   : > { %v4937_v59 = vpop.permute.xlu1 %3984  ;;  %v3572_v63 = vpack.c.bf16 %v704_v58, %v702_v61  ;;  %v547_v16 = vsel %vm404_vm1, %v3971_v14, %v3951_v46  ;;  %v549_v17 = vsel %vm404_vm1, %v3972_v13, %v3956_v34  ;;  %v670_v34 = vld [vmem:[#allocation7 + $0x48] sm:$0xff]  ;;  %v672_v58 = vld [vmem:[#allocation7 + $0x58] sm:$0xff] }
 0x103   : > { %v3987_v8 = vunpack.i.h.bf16 %v4937_v59  ;;  %v3986_v11 = vunpack.i.l.bf16 %v4937_v59  ;;  %v3980_v19 = vpop.permute.xlu0 %3979  ;;  %v3564_v20 = vpack.c.bf16 %v549_v17, %v547_v16  ;;  %v518_v13 = vld [vmem:[#allocation7 + $0x38] sm:$0xff] }
 0x104   : > { %3573 = vmatpush1.bf16.msra.mxu0 %v3572_v63  ;;  %v3982_v22 = vunpack.i.h.bf16 %v3980_v19  ;;  %v3981_v27 = vunpack.i.l.bf16 %v3980_v19 }
 0x105   : > { %v864_v21 = vsel %vm860_vm3, %v3986_v11, %v3987_v8  ;;  %3565 = vmatpush1.bf16.msra.mxu1 %v3564_v20 }
 0x106   : > { %v3995_v15 = vpop.permute.xlu1 %3994  ;;  %v862_v35 = vsel %vm860_vm3, %v3981_v27, %v3982_v22 }
 0x107   : > { %v3997_v28 = vunpack.i.h.bf16 %v3995_v15  ;;  %v3996_v29 = vunpack.i.l.bf16 %v3995_v15  ;;  %3479 = vmatmul.mubr.msk.f32.vlgmr.msra.gmra.mrb[8].mxu0 %vm404_vm1, %v669_v18  ;;  %v3990_v36 = vpop.permute.xlu0 %3989  ;;  %v3574_v37 = vpack.c.bf16 %v864_v21, %v862_v35 }
 0x108   : > { %796 = vmatprep.mubr.f32.mxu0 %v4551_v0  ;;  %v3992_v38 = vunpack.i.h.bf16 %v3990_v36  ;;  %v3991_v39 = vunpack.i.l.bf16 %v3990_v36  ;;  %3475 = vmatmul.mubr.msk.f32.vlgmr.msra.gmra.mrb[0].mxu1 %vm404_vm1, %v515_v32 }
 0x109   : > { %v1165_v42 = vsel %vm1161_vm4, %v3996_v29, %v3997_v28  ;;  %3575 = vmatprep.subr.bf16.mxu1 %v3574_v37  ;;  %641 = vmatprep.mubr.f32.mxu1 %v4551_v0 }
 0x10a   : > { %v4005_v30 = vpop.permute.xlu1 %4004  ;;  %v1163_v46 = vsel %vm1161_vm4, %v3991_v39, %v3992_v38 }
 0x10b   : > { %v4007_v31 = vunpack.i.h.bf16 %v4005_v30  ;;  %v4006_v33 = vunpack.i.l.bf16 %v4005_v30  ;;  %3480 = vmatmul.mubr.msk.f32.gmra.mrb[10].mxu0 %vm404_vm1, %v670_v34  ;;  %v4000_v49 = vpop.permute.xlu0 %3999  ;;  %v3590_v52 = vpack.c.bf16 %v1165_v42, %v1163_v46  ;;  %v832_v46 = vld [vmem:[#allocation7 + $0x60] sm:$0xff] }
 0x10c   : > { %802 = vmatprep.mubr.f32.mxu0 %v4551_v0  ;;  %v4002_v53 = vunpack.i.h.bf16 %v4000_v49  ;;  %v4001_v48 = vunpack.i.l.bf16 %v4000_v49  ;;  %3476 = vmatmul.mubr.msk.f32.gmra.mrb[2].mxu1 %vm404_vm1, %v516_v43 }
 0x10d   : > { %v1164_v40 = vsel %vm1161_vm4, %v4007_v31, %v3996_v29  ;;  %v1162_v44 = vsel %vm1161_vm4, %v4006_v33, %v3991_v39  ;;  %3591 = vmatprep.subr.bf16.mxu0 %v3590_v52  ;;  %647 = vmatprep.mubr.f32.mxu1 %v4551_v0  ;;  %v1121_v39 = vld [vmem:[#allocation7 + $0xa0] sm:$0xff] }
 0x10e   : > { %v4953_v41 = vpop.permute.xlu1 %4014  ;;  %v3592_v47 = vpack.c.bf16 %v1164_v40, %v1162_v44  ;;  %v861_v56 = vsel %vm860_vm3, %v4001_v48, %v3981_v27  ;;  %v863_v57 = vsel %vm860_vm3, %v4002_v53, %v3986_v11 }
 0x10f   : > { %v4017_v50 = vunpack.i.h.bf16 %v4953_v41  ;;  %v4016_v51 = vunpack.i.l.bf16 %v4953_v41  ;;  %3481 = vmatmul.mubr.msk.f32.gmra.mrb[12].mxu0 %vm404_vm1, %v671_v45  ;;  %v3576_v59 = vpack.c.bf16 %v863_v57, %v861_v56  ;;  %v4010_v60 = vpop.permute.xlu0 %4009  ;;  %v833_v56 = vld [vmem:[#allocation7 + $0x68] sm:$0xff] }
 0x110   : > { %3593 = vmatpush1.bf16.msra.mxu0 %v3592_v47  ;;  %808 = vmatprep.mubr.f32.mxu0 %v4551_v0  ;;  %v4012_v62 = vunpack.i.h.bf16 %v4010_v60  ;;  %v4011_v63 = vunpack.i.l.bf16 %v4010_v60  ;;  %v1122_v47 = vld [vmem:[#allocation7 + $0xa8] sm:$0xff] }
 0x111   : > { %v868_v61 = vsel %vm860_vm3, %v4016_v51, %v4017_v50  ;;  %3477 = vmatmul.mubr.msk.f32.gmra.mrb[4].mxu1 %vm404_vm1, %v517_v55 }
 0x112   : > { %v4025_v54 = vpop.permute.xlu1 %4024  ;;  %3577 = vmatpush1.bf16.msra.mxu1 %v3576_v59  ;;  %v866_v15 = vsel %vm860_vm3, %v4011_v63, %v4012_v62  ;;  %653 = vmatprep.mubr.f32.mxu1 %v4551_v0 }
 0x113   : > { %v4027_v4 = vunpack.i.h.bf16 %v4025_v54  ;;  %v4026_v8 = vunpack.i.l.bf16 %v4025_v54  ;;  %3482 = vmatmul.mubr.msk.f32.gmra.mrb[14].mxu0 %vm404_vm1, %v672_v58  ;;  %v4020_v16 = vpop.permute.xlu0 %4019  ;;  %v3578_v17 = vpack.c.bf16 %v868_v61, %v866_v15 }
 0x114   : > { %1254 = vmatprep.mubr.f32.mxu0 %v4551_v0  ;;  %v4022_v18 = vunpack.i.h.bf16 %v4020_v16  ;;  %v4021_v19 = vunpack.i.l.bf16 %v4020_v16 }
 0x115   : > { %v1169_v22 = vsel %vm1161_vm4, %v4026_v8, %v4027_v4  ;;  %3478 = vmatmul.mubr.msk.f32.gmra.mrb[6].mxu1 %vm404_vm1, %v518_v13  ;;  %3579 = vmatprep.subr.bf16.mxu1 %v3578_v17 }
 0x116   : > { %v4035_v12 = vpop.permute.xlu1 %4034  ;;  %953 = vmatprep.mubr.f32.mxu1 %v4551_v0  ;;  %v1167_v28 = vsel %vm1161_vm4, %v4021_v19, %v4022_v18 }
 0x117   : > { %v4037_v11 = vunpack.i.h.bf16 %v4035_v12  ;;  %v4036_v14 = vunpack.i.l.bf16 %v4035_v12  ;;  %v4030_v30 = vpop.permute.xlu0 %4029  ;;  %v3594_v31 = vpack.c.bf16 %v1169_v22, %v1167_v28  ;;  %v834_v12 = vld [vmem:[#allocation7 + $0x70] sm:$0xff] }
 0x118   : > { %v4032_v32 = vunpack.i.h.bf16 %v4030_v30  ;;  %v4031_v33 = vunpack.i.l.bf16 %v4030_v30 }
 0x119   : > { %v1168_v20 = vsel %vm1161_vm4, %v4037_v11, %v4026_v8  ;;  %v1166_v27 = vsel %vm1161_vm4, %v4036_v14, %v4021_v19  ;;  %3595 = vmatprep.subr.bf16.mxu0 %v3594_v31 }
 0x11a   : > { %v4045_v21 = vpop.permute.xlu1 %4044  ;;  %v3596_v29 = vpack.c.bf16 %v1168_v20, %v1166_v27  ;;  %v865_v37 = vsel %vm860_vm3, %v4031_v33, %v4011_v63  ;;  %v867_v38 = vsel %vm860_vm3, %v4032_v32, %v4016_v51  ;;  %v995_v33 = vld [vmem:[#allocation7 + $0x80] sm:$0xff] }
 0x11b   : > { %v4047_v34 = vunpack.i.h.bf16 %v4045_v21  ;;  %v4046_v35 = vunpack.i.l.bf16 %v4045_v21  ;;  %v3580_v40 = vpack.c.bf16 %v867_v38, %v865_v37  ;;  %v4040_v41 = vpop.permute.xlu0 %4039  ;;  %v835_v21 = vld [vmem:[#allocation7 + $0x78] sm:$0xff] }
 0x11c   : > { %3597 = vmatpush1.bf16.msra.mxu0 %v3596_v29  ;;  %v4042_v42 = vunpack.i.h.bf16 %v4040_v41  ;;  %v4041_v43 = vunpack.i.l.bf16 %v4040_v41 }
 0x11d   : > { %v1328_v45 = vsel %vm1324_vm5, %v4046_v35, %v4047_v34  ;;  %3581 = vmatpush1.bf16.msra.mxu1 %v3580_v40 }
 0x11e   : > { %v4055_v36 = vpop.permute.xlu1 %4054  ;;  %v1326_v49 = vsel %vm1324_vm5, %v4041_v43, %v4042_v42  ;;  %3583 = vmatprep.subr.bf16.mxu1 %v3582_v23  ;;  %v1123_v23 = vld [vmem:[#allocation7 + $0xb0] sm:$0xff] }
 0x11f   : > { %3491 = vmatmul.mubr.msk.f32.vlgmr.msra.gmra.mrb[16].mxu0 %vm404_vm1, %v1121_v39  ;;  %v4050_v50 = vpop.permute.xlu0 %4049  ;;  %v3598_v51 = vpack.c.bf16 %v1328_v45, %v1326_v49  ;;  %v4057_v54 = vunpack.i.h.bf16 %v4055_v36  ;;  %v4056_v55 = vunpack.i.l.bf16 %v4055_v36  ;;  %v996_v45 = vld [vmem:[#allocation7 + $0x88] sm:$0xff]  ;;  %v1298_v49 = vld [vmem:[#allocation7 + $0xd0] sm:$0xff] }
 0x120   : > { %1260 = vmatprep.mubr.f32.mxu0 %v4551_v0  ;;  %v4052_v52 = vunpack.i.h.bf16 %v4050_v50  ;;  %v4051_v53 = vunpack.i.l.bf16 %v4050_v50  ;;  %3483 = vmatmul.mubr.msk.f32.vlgmr.msra.gmra.mrb[8].mxu1 %vm404_vm1, %v832_v46 }
 0x121   : > { %3599 = vmatprep.subr.bf16.mxu0 %v3598_v51  ;;  %959 = vmatprep.mubr.f32.mxu1 %v4551_v0  ;;  %v1330_v11 = vsel %vm1324_vm5, %v4056_v55, %v4057_v54 }
 0x122   : > { %v4065_v44 = vpop.permute.xlu1 %4064  ;;  %v1325_v57 = vsel %vm1324_vm5, %v4051_v53, %v4041_v43  ;;  %v1327_v58 = vsel %vm1324_vm5, %v4052_v52, %v4046_v35  ;;  %3585 = vmatpush1.bf16.msra.mxu1 %v3584_v24  ;;  %v1124_v24 = vld [vmem:[#allocation7 + $0xb8] sm:$0xff]  ;;  %v1297_v35 = vld [vmem:[#allocation7 + $0xc8] sm:$0xff] }
 0x123   : > { %3492 = vmatmul.mubr.msk.f32.gmra.mrb[18].mxu0 %vm404_vm1, %v1122_v47  ;;  %v4067_v2 = vunpack.i.h.bf16 %v4065_v44  ;;  %v4066_v5 = vunpack.i.l.bf16 %v4065_v44  ;;  %v3600_v59 = vpack.c.bf16 %v1327_v58, %v1325_v57  ;;  %v4060_v60 = vpop.permute.xlu0 %4059  ;;  %3587 = vmatprep.subr.bf16.mxu1 %v3586_v25  ;;  %v997_v58 = vld [vmem:[#allocation7 + $0x90] sm:$0xff] }
 0x124   : > { %1266 = vmatprep.mubr.f32.mxu0 %v4551_v0  ;;  %v4062_v63 = vunpack.i.h.bf16 %v4060_v60  ;;  %v4061_v4 = vunpack.i.l.bf16 %v4060_v60  ;;  %3484 = vmatmul.mubr.msk.f32.gmra.mrb[10].mxu1 %vm404_vm1, %v833_v56 }
 0x125   : > { %965 = vmatprep.mubr.f32.mxu1 %v4551_v0  ;;  %v1329_v1 = vsel %vm1324_vm5, %v4066_v5, %v4056_v55  ;;  %3601 = vmatpush1.bf16.msra.mxu0 %v3600_v59  ;;  %v1299_v5 = vld [vmem:[#allocation7 + $0xd8] sm:$0xff] }
 0x126   : > { %v4992_v48 = vpop.permute.xlu1 %4074  ;;  %v1331_v3 = vsel %vm1324_vm5, %v4067_v2, %v4061_v4  ;;  %v1332_v13 = vsel %vm1324_vm5, %v4061_v4, %v4062_v63  ;;  %3589 = vmatpush1.bf16.msra.mxu1 %v3588_v26 }
 0x127   : > { %v4077_v61 = vunpack.i.h.bf16 %v4992_v48  ;;  %v4076_v62 = vunpack.i.l.bf16 %v4992_v48  ;;  %3493 = vmatmul.mubr.msk.f32.gmra.mrb[20].mxu0 %vm404_vm1, %v1123_v23  ;;  %v3604_v7 = vpack.c.bf16 %v1331_v3, %v1329_v1  ;;  %v4070_v10 = vpop.permute.xlu0 %4069  ;;  %v3602_v25 = vpack.c.bf16 %v1332_v13, %v1330_v11 }
 0x128   : > { %1272 = vmatprep.mubr.f32.mxu0 %v4551_v0  ;;  %v4072_v15 = vunpack.i.h.bf16 %v4070_v10  ;;  %v4071_v16 = vunpack.i.l.bf16 %v4070_v10  ;;  %3485 = vmatmul.mubr.msk.f32.gmra.mrb[12].mxu1 %vm404_vm1, %v834_v12 }
 0x129   : > { %v1491_v14 = vsel %vm1487_vm6, %v4076_v62, %v4077_v61  ;;  %3603 = vmatprep.subr.bf16.mxu0 %v3602_v25  ;;  %971 = vmatprep.mubr.f32.mxu1 %v4551_v0 }
 0x12a   : > { %v4085_v8 = vpop.permute.xlu1 %4084  ;;  %3605 = vmatpush1.bf16.msra.mxu0 %v3604_v7  ;;  %v1489_v26 = vsel %vm1487_vm6, %v4071_v16, %v4072_v15 }
 0x12b   : > { %v4087_v17 = vunpack.i.h.bf16 %v4085_v8  ;;  %v4086_v18 = vunpack.i.l.bf16 %v4085_v8  ;;  %3494 = vmatmul.mubr.msk.f32.gmra.mrb[22].mxu0 %vm404_vm1, %v1124_v24  ;;  %v4080_v22 = vpop.permute.xlu0 %4079  ;;  %v3606_v27 = vpack.c.bf16 %v1491_v14, %v1489_v26  ;;  %v998_v8 = vld [vmem:[#allocation7 + $0x98] sm:$0xff]  ;;  %v1614_v14 = vld [vmem:[#allocation7 + $0x100] sm:$0xff] }
 0x12c   : > { %1417 = vmatprep.mubr.f32.mxu0 %v4551_v0  ;;  %v4082_v28 = vunpack.i.h.bf16 %v4080_v22  ;;  %v4081_v29 = vunpack.i.l.bf16 %v4080_v22  ;;  %3486 = vmatmul.mubr.msk.f32.gmra.mrb[14].mxu1 %vm404_vm1, %v835_v21  ;;  %v1617_v21 = vld [vmem:[#allocation7 + $0x118] sm:$0xff] }
 0x12d   : > { %v1646_v32 = vsel %vm1642_vm7, %v4086_v18, %v4087_v17  ;;  %3607 = vmatprep.subr.bf16.mxu1 %v3606_v27  ;;  %1075 = vmatprep.mubr.f32.mxu1 %v4551_v0  ;;  %v1615_v17 = vld [vmem:[#allocation7 + $0x108] sm:$0xff] }
 0x12e   : > { %v4095_v19 = vpop.permute.xlu1 %4094  ;;  %v1644_v36 = vsel %vm1642_vm7, %v4081_v29, %v4082_v28 }
 0x12f   : > { %v4097_v20 = vunpack.i.h.bf16 %v4095_v19  ;;  %v4096_v6 = vunpack.i.l.bf16 %v4095_v19  ;;  %3495 = vmatmul.mubr.msk.f32.vlgmr.msra.gmra.mrb[24].mxu0 %vm404_vm1, %v1296_v9  ;;  %v4090_v38 = vpop.permute.xlu0 %4089  ;;  %v3614_v41 = vpack.c.bf16 %v1646_v32, %v1644_v36  ;;  %v1616_v19 = vld [vmem:[#allocation7 + $0x110] sm:$0xff]  ;;  %v272_v9 = vlaneseq }
 0x130   : > { %1423 = vmatprep.mubr.f32.mxu0 %v4551_v0  ;;  %v4092_v42 = vunpack.i.h.bf16 %v4090_v38  ;;  %v4091_v43 = vunpack.i.l.bf16 %v4090_v38  ;;  %3487 = vmatmul.mubr.msk.f32.vlgmr.msra.gmra.mrb[0].mxu1 %vm404_vm1, %v995_v33 }
 0x131   : > { %v1645_v30 = vsel %vm1642_vm7, %v4097_v20, %v4086_v18  ;;  %v1643_v34 = vsel %vm1642_vm7, %v4096_v6, %v4081_v29  ;;  %3615 = vmatprep.subr.bf16.mxu0 %v3614_v41  ;;  %1081 = vmatprep.mubr.f32.mxu1 %v4551_v0  ;;  %v1460_v18 = vld [vmem:[#allocation7 + $0xe8] sm:$0xff]  ;;  %v1461_v20 = vld [vmem:[#allocation7 + $0xf0] sm:$0xff]  ;;  %v1462_v6 = vld [vmem:[#allocation7 + $0xf8] sm:$0xff]  ;;  %v273_v27 = vand.u32 127, %v272_v9 }
 0x132   : > { %v5028_v31 = vpop.permute.xlu1 %4104  ;;  %v3616_v37 = vpack.c.bf16 %v1645_v30, %v1643_v34  ;;  %v1488_v46 = vsel %vm1487_vm6, %v4091_v43, %v4071_v16  ;;  %v1490_v47 = vsel %vm1487_vm6, %v4092_v42, %v4076_v62  ;;  %v1459_v16 = vld [vmem:[#allocation7 + $0xe0] sm:$0xff] }
 0x133   : > { %v4107_v39 = vunpack.i.h.bf16 %v5028_v31  ;;  %v4106_v40 = vunpack.i.l.bf16 %v5028_v31  ;;  %3496 = vmatmul.mubr.msk.f32.gmra.mrb[26].mxu0 %vm404_vm1, %v1297_v35  ;;  %v3608_v50 = vpack.c.bf16 %v1490_v47, %v1488_v46  ;;  %v4100_v51 = vpop.permute.xlu0 %4099  ;;  %v274_v30 = vadd.s32 128, %v273_v27 }
 0x134   : > { %3617 = vmatpush1.bf16.msra.mxu0 %v3616_v37  ;;  %1429 = vmatprep.mubr.f32.mxu0 %v4551_v0  ;;  %v4102_v53 = vunpack.i.h.bf16 %v4100_v51  ;;  %v4101_v54 = vunpack.i.l.bf16 %v4100_v51  ;;  %v279_v32 = vand.u32 15, %v273_v27  ;;  %v5088_v37 = vld [vmem:[#allocation2] sm:$0xff] }
 0x135   : > { %v1495_v52 = vsel %vm1487_vm6, %v4106_v40, %v4107_v39  ;;  %3488 = vmatmul.mubr.msk.f32.gmra.mrb[2].mxu1 %vm404_vm1, %v996_v45  ;;  %v286_v34 = vand.u32 15, %v274_v30 }
 0x136   : > { %v4115_v44 = vpop.permute.xlu1 %4114  ;;  %3609 = vmatpush1.bf16.msra.mxu1 %v3608_v50  ;;  %v1493_v23 = vsel %vm1487_vm6, %v4101_v54, %v4102_v53  ;;  %1087 = vmatprep.mubr.f32.mxu1 %v4551_v0  ;;  %vm299_vm8 = vcmp.ge.s32.totalorder %v279_v32, 2  ;;  %vm305_vm9 = vcmp.lt.s32.totalorder %v279_v32, 14 }
 0x137   : > { %v4117_v55 = vunpack.i.h.bf16 %v4115_v44  ;;  %v4116_v56 = vunpack.i.l.bf16 %v4115_v44  ;;  %3497 = vmatmul.mubr.msk.f32.gmra.mrb[28].mxu0 %vm404_vm1, %v1298_v49  ;;  %v4110_v59 = vpop.permute.xlu0 %4109  ;;  %v3610_v60 = vpack.c.bf16 %v1495_v52, %v1493_v23  ;;  %v5091_v38 = vsel %vm299_vm8, 1.0, %v5088_v37 }
 0x138   : > { %1435 = vmatprep.mubr.f32.mxu0 %v4551_v0  ;;  %v4112_v61 = vunpack.i.h.bf16 %v4110_v59  ;;  %v4111_v62 = vunpack.i.l.bf16 %v4110_v59  ;;  %vm300_vm10 = vcmp.ge.s32.totalorder %v286_v34, 2  ;;  %vm306_vm11 = vcmp.lt.s32.totalorder %v286_v34, 14 }
 0x139   : > { %3489 = vmatmul.mubr.msk.f32.gmra.mrb[4].mxu1 %vm404_vm1, %v997_v58  ;;  %v1650_v4 = vsel %vm1642_vm7, %v4116_v56, %v4117_v55  ;;  %3611 = vmatprep.subr.bf16.mxu1 %v3610_v60  ;;  %v5094_v39 = vsel %vm305_vm9, 1.0, %v5088_v37  ;;  %v5098_v41 = vsel %vm300_vm10, 1.0, %v5088_v37  ;;  %v5101_v42 = vsel %vm306_vm11, 1.0, %v5088_v37 }
 0x13a   : > { %v4125_v57 = vpop.permute.xlu1 %4124  ;;  %v1648_v11 = vsel %vm1642_vm7, %v4111_v62, %v4112_v61  ;;  %1093 = vmatprep.mubr.f32.mxu1 %v4551_v0 }
 0x13b   : > { %v4127_v48 = vunpack.i.h.bf16 %v4125_v57  ;;  %v4126_v2 = vunpack.i.l.bf16 %v4125_v57  ;;  %3498 = vmatmul.mubr.msk.f32.gmra.mrb[30].mxu0 %vm404_vm1, %v1299_v5  ;;  %v4120_v3 = vpop.permute.xlu0 %4119  ;;  %v3618_v24 = vpack.c.bf16 %v1650_v4, %v1648_v11 }
 0x13c   : > { %1735 = vmatprep.mubr.f32.mxu0 %v4551_v0  ;;  %v4122_v13 = vunpack.i.h.bf16 %v4120_v3  ;;  %v4121_v7 = vunpack.i.l.bf16 %v4120_v3 }
 0x13d   : > { %v1649_v63 = vsel %vm1642_vm7, %v4127_v48, %v4116_v56  ;;  %v1647_v12 = vsel %vm1642_vm7, %v4126_v2, %v4111_v62  ;;  %3490 = vmatmul.mubr.msk.f32.gmra.mrb[6].mxu1 %vm404_vm1, %v998_v8  ;;  %3619 = vmatprep.subr.bf16.mxu0 %v3618_v24 }
 0x13e   : > { %v3620_v1 = vpack.c.bf16 %v1649_v63, %v1647_v12  ;;  %1580 = vmatprep.mubr.f32.mxu1 %v4551_v0  ;;  %v1492_v10 = vsel %vm1487_vm6, %v4121_v7, %v4101_v54  ;;  %v1494_v25 = vsel %vm1487_vm6, %v4122_v13, %v4106_v40 }
 0x13f   : > { %v3612_v15 = vpack.c.bf16 %v1494_v25, %v1492_v10 }
 0x140   : > { %3621 = vmatpush1.bf16.msra.mxu0 %v3620_v1 }
 0x141   : > { %3613 = vmatpush1.bf16.msra.mxu1 %v3612_v15 }
 0x143   : > { %3503 = vmatmul.mubr.msk.f32.vlgmr.msra.gmra.mrb[32].mxu0 %vm404_vm1, %v1614_v14 }
 0x144   : > { %1741 = vmatprep.mubr.f32.mxu0 %v4551_v0  ;;  %3499 = vmatmul.mubr.msk.f32.vlgmr.msra.gmra.mrb[0].mxu1 %vm404_vm1, %v1459_v16 }
 0x145   : > { %1586 = vmatprep.mubr.f32.mxu1 %v4551_v0 }
 0x147   : > { %3504 = vmatmul.mubr.msk.f32.gmra.mrb[34].mxu0 %vm404_vm1, %v1615_v17 }
 0x148   : > { %1747 = vmatprep.mubr.f32.mxu0 %v4551_v0  ;;  %3500 = vmatmul.mubr.msk.f32.gmra.mrb[2].mxu1 %vm404_vm1, %v1460_v18 }
 0x149   : > { %1592 = vmatprep.mubr.f32.mxu1 %v4551_v0 }
 0x14b   : > { %3505 = vmatmul.mubr.msk.f32.gmra.mrb[36].mxu0 %vm404_vm1, %v1616_v19 }
 0x14c   : > { %1753 = vmatprep.mubr.f32.mxu0 %v4551_v0  ;;  %3501 = vmatmul.mubr.msk.f32.gmra.mrb[4].mxu1 %vm404_vm1, %v1461_v20 }
 0x14d   : > { %1598 = vmatprep.mubr.f32.mxu1 %v4551_v0 }
 0x14f   : > { %3506 = vmatmul.mubr.msk.f32.gmra.mrb[38].mxu0 %vm404_vm1, %v1617_v21 }
 0x150   : > { %2098 = vmatprep.mubr.f32.mxu0 %v4551_v0  ;;  %3502 = vmatmul.mubr.msk.f32.gmra.mrb[6].mxu1 %vm404_vm1, %v1462_v6 }
 0x151   : > { %1944 = vmatprep.mubr.f32.mxu1 %v4551_v0 }
 0x1c4   : > { %v483_v26 = vpop.f32.mrb[0].mxu0 }
 0x1c5   : > { %v485_v22 = vpop.f32.mrb[1].mxu0  ;;  %v506_v40 = vmul.f32 %v5091_v38, %v483_v26 }
 0x1c6   : > { %v507_v46 = vmul.f32 %v5098_v41, %v485_v22 }
 0x1c8   : > { %v489_v28 = vpop.f32.mrb[2].mxu0 }
 0x1c9   : > { %v491_v29 = vpop.f32.mrb[3].mxu0  ;;  %v508_v49 = vmul.f32 %v5091_v38, %v489_v28 }
 0x1ca   : > { %v509_v55 = vmul.f32 %v5098_v41, %v491_v29 }
 0x1cc   : > { %v495_v31 = vpop.f32.mrb[4].mxu0 }
 0x1cd   : > { %v497_v33 = vpop.f32.mrb[5].mxu0  ;;  %v510_v57 = vmul.f32 %v5091_v38, %v495_v31 }
 0x1ce   : > { %v511_v59 = vmul.f32 %v5098_v41, %v497_v33 }
 0x1d0   : > { %v501_v35 = vpop.f32.mrb[6].mxu0 }
 0x1d1   : > { %v503_v36 = vpop.f32.mrb[7].mxu0  ;;  %v512_v61 = vmul.f32 %v5091_v38, %v501_v35 }
 0x1d2   : > { %v513_v11 = vmul.f32 %v5098_v41, %v503_v36 }
 0x1da   : > { %v792_v43 = vpop.f32.mrb[8].mxu0 }
 0x1db   : > { %v815_v44 = vmul.f32 %v5094_v39, %v792_v43  ;;  %v794_v45 = vpop.f32.mrb[9].mxu0 }
 0x1dc   : > { %v816_v47 = vmul.f32 %v5101_v42, %v794_v45 }
 0x1dd   : > { %v3694_v50 = vadd.f32 %v815_v44, %v506_v40 }
 0x1de   : > { %v3699_v51 = vadd.f32 %v816_v47, %v507_v46  ;;  %v798_v52 = vpop.f32.mrb[10].mxu0 }
 0x1df   : > { %v817_v53 = vmul.f32 %v5094_v39, %v798_v52  ;;  %v800_v54 = vpop.f32.mrb[11].mxu0 }
 0x1e0   : > { %v818_v56 = vmul.f32 %v5101_v42, %v800_v54 }
 0x1e1   : > { %v3704_v48 = vadd.f32 %v817_v53, %v508_v49 }
 0x1e2   : > { %v3709_v58 = vadd.f32 %v818_v56, %v509_v55  ;;  %v804_v2 = vpop.f32.mrb[12].mxu0 }
 0x1e3   : > { %v819_v5 = vmul.f32 %v5094_v39, %v804_v2  ;;  %v806_v23 = vpop.f32.mrb[13].mxu0 }
 0x1e4   : > { %v820_v60 = vmul.f32 %v5101_v42, %v806_v23 }
 0x1e5   : > { %v3714_v62 = vadd.f32 %v819_v5, %v510_v57 }
 0x1e6   : > { %v3719_v63 = vadd.f32 %v820_v60, %v511_v59  ;;  %v810_v4 = vpop.f32.mrb[14].mxu0 }
 0x1e7   : > { %v821_v8 = vmul.f32 %v5094_v39, %v810_v4  ;;  %v812_v12 = vpop.f32.mrb[15].mxu0 }
 0x1e8   : > { %v822_v1 = vmul.f32 %v5101_v42, %v812_v12 }
 0x1e9   : > { %v3724_v3 = vadd.f32 %v821_v8, %v512_v61 }
 0x1ea   : > { %v3729_v24 = vadd.f32 %v822_v1, %v513_v11 }
 0x1f2   : > { %v1256_v13 = vpop.f32.mrb[16].mxu0 }
 0x1f3   : > { %v1258_v7 = vpop.f32.mrb[17].mxu0  ;;  %v955_v10 = vpop.f32.mrb[8].mxu1  ;;  %v1279_v15 = vmul.f32 %v5094_v39, %v1256_v13 }
 0x1f4   : > { %v978_v25 = vmul.f32 %v5091_v38, %v955_v10  ;;  %v957_v14 = vpop.f32.mrb[9].mxu1  ;;  %v1280_v18 = vmul.f32 %v5101_v42, %v1258_v7 }
 0x1f5   : > { %v979_v17 = vmul.f32 %v5098_v41, %v957_v14 }
 0x1f6   : > { %v1262_v16 = vpop.f32.mrb[18].mxu0  ;;  %v3695_v20 = vadd.f32 %v3694_v50, %v978_v25 }
 0x1f7   : > { %v1264_v19 = vpop.f32.mrb[19].mxu0  ;;  %v3700_v21 = vadd.f32 %v3699_v51, %v979_v17  ;;  %v961_v6 = vpop.f32.mrb[10].mxu1  ;;  %v1281_v27 = vmul.f32 %v5094_v39, %v1262_v16 }
 0x1f8   : > { %v3696_v9 = vadd.f32 %v3695_v20, %v1279_v15  ;;  %v980_v26 = vmul.f32 %v5091_v38, %v961_v6  ;;  %v963_v22 = vpop.f32.mrb[11].mxu1  ;;  %v1282_v31 = vmul.f32 %v5101_v42, %v1264_v19 }
 0x1f9   : > { %v3701_v29 = vadd.f32 %v3700_v21, %v1280_v18  ;;  %v981_v30 = vmul.f32 %v5098_v41, %v963_v22 }
 0x1fa   : > { %v1268_v28 = vpop.f32.mrb[20].mxu0  ;;  %v3705_v33 = vadd.f32 %v3704_v48, %v980_v26 }
 0x1fb   : > { %v1270_v32 = vpop.f32.mrb[21].mxu0  ;;  %v3710_v34 = vadd.f32 %v3709_v58, %v981_v30  ;;  %v967_v35 = vpop.f32.mrb[12].mxu1  ;;  %v1283_v44 = vmul.f32 %v5094_v39, %v1268_v28 }
 0x1fc   : > { %v3706_v36 = vadd.f32 %v3705_v33, %v1281_v27  ;;  %v982_v40 = vmul.f32 %v5091_v38, %v967_v35  ;;  %v969_v43 = vpop.f32.mrb[13].mxu1  ;;  %v1284_v49 = vmul.f32 %v5101_v42, %v1270_v32 }
 0x1fd   : > { %v3711_v46 = vadd.f32 %v3710_v34, %v1282_v31  ;;  %v983_v47 = vmul.f32 %v5098_v41, %v969_v43 }
 0x1fe   : > { %v1274_v45 = vpop.f32.mrb[22].mxu0  ;;  %v3715_v51 = vadd.f32 %v3714_v62, %v982_v40 }
 0x1ff   : > { %v1276_v50 = vpop.f32.mrb[23].mxu0  ;;  %v3720_v52 = vadd.f32 %v3719_v63, %v983_v47  ;;  %v973_v53 = vpop.f32.mrb[14].mxu1  ;;  %v1285_v55 = vmul.f32 %v5094_v39, %v1274_v45 }
 0x200   : > { %v3716_v54 = vadd.f32 %v3715_v51, %v1283_v44  ;;  %v984_v56 = vmul.f32 %v5091_v38, %v973_v53  ;;  %v975_v57 = vpop.f32.mrb[15].mxu1  ;;  %v1286_v2 = vmul.f32 %v5101_v42, %v1276_v50 }
 0x201   : > { %v3721_v58 = vadd.f32 %v3720_v52, %v1284_v49  ;;  %v985_v5 = vmul.f32 %v5098_v41, %v975_v57 }
 0x202   : > { %v1419_v48 = vpop.f32.mrb[24].mxu0  ;;  %v3725_v60 = vadd.f32 %v3724_v3, %v984_v56 }
 0x203   : > { %v1442_v23 = vmul.f32 %v5091_v38, %v1419_v48  ;;  %v1421_v59 = vpop.f32.mrb[25].mxu0  ;;  %v3730_v62 = vadd.f32 %v3729_v24, %v985_v5 }
 0x204   : > { %v1443_v61 = vmul.f32 %v5098_v41, %v1421_v59  ;;  %v3726_v12 = vadd.f32 %v3725_v60, %v1285_v55 }
 0x205   : > { %v3697_v63 = vadd.f32 %v3696_v9, %v1442_v23  ;;  %v3731_v13 = vadd.f32 %v3730_v62, %v1286_v2 }
 0x206   : > { %v1425_v4 = vpop.f32.mrb[26].mxu0  ;;  %v3702_v8 = vadd.f32 %v3701_v29, %v1443_v61 }
 0x207   : > { %v1444_v11 = vmul.f32 %v5091_v38, %v1425_v4  ;;  %v1427_v1 = vpop.f32.mrb[27].mxu0 }
 0x208   : > { %v1445_v7 = vmul.f32 %v5098_v41, %v1427_v1 }
 0x209   : > { %v3707_v10 = vadd.f32 %v3706_v36, %v1444_v11 }
 0x20a   : > { %v1431_v25 = vpop.f32.mrb[28].mxu0  ;;  %v3712_v14 = vadd.f32 %v3711_v46, %v1445_v7 }
 0x20b   : > { %v1446_v15 = vmul.f32 %v5091_v38, %v1431_v25  ;;  %v1433_v16 = vpop.f32.mrb[29].mxu0 }
 0x20c   : > { %v1447_v3 = vmul.f32 %v5098_v41, %v1433_v16 }
 0x20d   : > { %v3717_v17 = vadd.f32 %v3716_v54, %v1446_v15 }
 0x20e   : > { %v1437_v24 = vpop.f32.mrb[30].mxu0  ;;  %v3722_v18 = vadd.f32 %v3721_v58, %v1447_v3 }
 0x20f   : > { %v1448_v19 = vmul.f32 %v5091_v38, %v1437_v24  ;;  %v1439_v20 = vpop.f32.mrb[31].mxu0 }
 0x210   : > { %v1449_v21 = vmul.f32 %v5098_v41, %v1439_v20 }
 0x211   : > { %v3727_v6 = vadd.f32 %v3726_v12, %v1448_v19 }
 0x212   : > { %v3732_v9 = vadd.f32 %v3731_v13, %v1449_v21 }
 0x216   : > { %v1737_v26 = vpop.f32.mrb[32].mxu0 }
 0x217   : > { %v1739_v22 = vpop.f32.mrb[33].mxu0  ;;  %v1760_v27 = vmul.f32 %v5094_v39, %v1737_v26  ;;  %v1582_v28 = vpop.f32.mrb[0].mxu1  ;;  %v2574_v26 = vld [vmem:[#allocation3 + $0x38] sm:$0xff] }
 0x218   : > { %v1761_v29 = vmul.f32 %v5101_v42, %v1739_v22  ;;  %v3698_v30 = vadd.f32 %v3697_v63, %v1582_v28  ;;  %v1584_v31 = vpop.f32.mrb[1].mxu1 }
 0x219   : > { %v3703_v33 = vadd.f32 %v3702_v8, %v1584_v31  ;;  %v2580_v31 = vld [vmem:[#allocation3 + $0x78] sm:$0xff] }
 0x21a   : > { %v1743_v32 = vpop.f32.mrb[34].mxu0  ;;  %v1768_v35 = vadd.f32 %v3698_v30, %v1760_v27  ;;  %v2571_v27 = vld [vmem:[#allocation3 + $0x18] sm:$0xff] }
 0x21b   : > { %v1745_v34 = vpop.f32.mrb[35].mxu0  ;;  %v1762_v36 = vmul.f32 %v5094_v39, %v1743_v32  ;;  %v1769_v40 = vadd.f32 %v3703_v33, %v1761_v29  ;;  %v1588_v43 = vpop.f32.mrb[2].mxu1  ;;  %v2577_v29 = vld [vmem:[#allocation3 + $0x58] sm:$0xff] }
 0x21c   : > { %v1763_v44 = vmul.f32 %v5101_v42, %v1745_v34  ;;  %v5146_v45 = vmax.f32 %v1768_v35, 0.0  ;;  %v3708_v46 = vadd.f32 %v3707_v10, %v1588_v43  ;;  %v1590_v47 = vpop.f32.mrb[3].mxu1  ;;  %v4135_v33 = vpop.permute.xlu1 %4134 }
 0x21d   : > { %v5148_v50 = vmax.f32 %v1769_v40, 0.0  ;;  %v3713_v51 = vadd.f32 %v3712_v14, %v1590_v47 }
 0x21e   : > { %v1749_v49 = vpop.f32.mrb[36].mxu0  ;;  %v1770_v53 = vadd.f32 %v3708_v46, %v1762_v36 }
 0x21f   : > { %v1751_v52 = vpop.f32.mrb[37].mxu0  ;;  %v1764_v54 = vmul.f32 %v5094_v39, %v1749_v49  ;;  %v1771_v55 = vadd.f32 %v3713_v51, %v1763_v44  ;;  %v1594_v56 = vpop.f32.mrb[4].mxu1  ;;  %v4148_v48 = vpack.i.bf16 %v5148_v50, %v5146_v45  ;;  %v4218_v28 = vpack.i.bf16 %v2571_v27, %v5148_v50 }
 0x220   : > { %v1765_v57 = vmul.f32 %v5101_v42, %v1751_v52  ;;  %v5154_v58 = vmax.f32 %v1770_v53, 0.0  ;;  %v3718_v2 = vadd.f32 %v3717_v17, %v1594_v56  ;;  %v1596_v5 = vpop.f32.mrb[5].mxu1  ;;  %v5244_v35 = vpop.permute.xlu1 %4144 }
 0x221   : > { %v5156_v59 = vmax.f32 %v1771_v55, 0.0  ;;  %v3723_v60 = vadd.f32 %v3722_v18, %v1596_v5  ;;  %4149 = vrot.lane.b32.xlu0 %v4148_v48, %s4552_s24 }
 0x222   : > { %v1755_v23 = vpop.f32.mrb[38].mxu0  ;;  %v1772_v62 = vadd.f32 %v3718_v2, %v1764_v54  ;;  %v5162_v4 = vpack.i.bf16 %v5154_v58, %v5146_v45  ;;  %v3656_v8 = vpack.c.bf16 %v5154_v58, %v5146_v45  ;;  %v2583_v45 = vld [vmem:[#allocation9 + $0xa8] sm:$0xff] }
 0x223   : > { %v1757_v61 = vpop.f32.mrb[39].mxu0  ;;  %v1766_v63 = vmul.f32 %v5094_v39, %v1755_v23  ;;  %v1773_v12 = vadd.f32 %v3723_v60, %v1765_v57  ;;  %v1600_v11 = vpop.f32.mrb[6].mxu1  ;;  %v4163_v13 = vpack.i.bf16 %v5156_v59, %v5154_v58  ;;  %v3654_v7 = vpack.c.bf16 %v5156_v59, %v5148_v50 }
 0x224   : > { %v1767_v1 = vmul.f32 %v5101_v42, %v1757_v61  ;;  %v5171_v10 = vmax.f32 %v1772_v62, 0.0  ;;  %v3728_v25 = vadd.f32 %v3727_v6, %v1600_v11  ;;  %v1602_v14 = vpop.f32.mrb[7].mxu1  ;;  %v4223_v22 = vpack.i.bf16 %v2574_v26, %v5156_v59 }
 0x225   : > { %v5173_v15 = vmax.f32 %v1773_v12, 0.0  ;;  %v3733_v16 = vadd.f32 %v3732_v9, %v1602_v14  ;;  %4154 = vrot.lane.b32.xlu0 %v4148_v48, %s4553_s26  ;;  %4164 = vrot.lane.b32.xlu1 %v4163_v13, %s4552_s24 }
 0x226   : > { %v1774_v3 = vadd.f32 %v3728_v25, %v1766_v63 }
 0x227   : > { %v1775_v17 = vadd.f32 %v3733_v16, %v1767_v1  ;;  %v4183_v24 = vpack.i.bf16 %v5173_v15, %v5171_v10  ;;  %v4253_v30 = vpack.i.bf16 %v2577_v29, %v5173_v15 }
 0x228   : > { %v5179_v18 = vmax.f32 %v1774_v3, 0.0 }
 0x229   : > { %v5181_v19 = vmax.f32 %v1775_v17, 0.0  ;;  %4159 = vrot.lane.b32.xlu0 %v4148_v48, %s4554_s8  ;;  %4169 = vrot.lane.b32.xlu1 %v4163_v13, %s4553_s26 }
 0x22a   : > { %v4263_v20 = vpack.i.bf16 %v5179_v18, %v5171_v10  ;;  %v3660_v21 = vpack.c.bf16 %v5179_v18, %v5171_v10 }
 0x22b   : > { %v4188_v6 = vpack.i.bf16 %v5181_v19, %v5179_v18  ;;  %v3658_v9 = vpack.c.bf16 %v5181_v19, %v5173_v15  ;;  %v4278_v32 = vpack.i.bf16 %v2580_v31, %v5181_v19  ;;  %v2296_v15 = vld [vmem:[#allocation9 + $0x70] sm:$0xff] }
 0x22d   : > { %4174 = vrot.lane.b32.xlu1 %v4163_v13, %s4554_s8  ;;  %4184 = vrot.lane.b32.xlu0 %v4183_v24, %s4553_s26 }
 0x231   : > { %4179 = vrot.lane.b32.xlu1 %v4183_v24, %s4552_s24  ;;  %4189 = vrot.lane.b32.xlu0 %v4188_v6, %s4552_s24  ;;  %s3362_s24 = sshll.u32 %s271_s7, 4  ;;  %s5544_s24 = int_to_ptr.vmem [resolvable:$true] %s3362_s24 }
 0x235   : > { %4204 = vrot.lane.b32.xlu1 %v4551_v0, %s4554_s8  ;;  %4194 = vrot.lane.b32.xlu0 %v4183_v24, %s4554_s8 }
 0x239   : > { %4214 = vrot.lane.b32.xlu1 %v4163_v13, %s4555_s10  ;;  %4199 = vrot.lane.b32.xlu0 %v4551_v0, %s4553_s26 }
 0x23d   : > { %4224 = vrot.lane.b32.xlu1 %v4223_v22, %s4556_s11  ;;  %4209 = vrot.lane.b32.xlu0 %v4148_v48, %s4555_s10 }
 0x241   : > { %4234 = vrot.lane.b32.xlu1 %v4188_v6, %s4553_s26  ;;  %4219 = vrot.lane.b32.xlu0 %v4218_v28, %s4556_s11  ;;  %s5542_s26 = scalar_lea.hbm %s5593_s5, %s3549_s13 }
 0x245   : > { %4239 = vrot.lane.b32.xlu1 %v4188_v6, %s4554_s8  ;;  %4229 = vrot.lane.b32.xlu0 %v4551_v0, %s4555_s10  ;;  %s4472_s8 = scalar_lea.vmem %s5544_s24, 1024 }
 0x246   : > { %p4473_p11 = scmp.ne.s32.totalorder %s5544_s24, %s4472_s8 }
 0x248   : > { %p4474_p1 = pnand %p4473_p11, %p5607_p0 }
 0x249   : > { %4244 = vrot.lane.b32.xlu1 %v5162_v4, %s4556_s11  ;;  %4249 = vrot.lane.b32.xlu0 %v4183_v24, %s4555_s10 }
 0x24a   : > { %p4475_p3 = pneg %p4474_p1 }
 0x24d   : > { %4264 = vrot.lane.b32.xlu1 %v4263_v20, %s4556_s11  ;;  %4254 = vrot.lane.b32.xlu0 %v4253_v30, %s4556_s11 }
 0x251   : > { %4274 = vrot.lane.b32.xlu1 %v4188_v6, %s4555_s10  ;;  %4259 = vrot.lane.b32.xlu0 %v4551_v0, %s4555_s10  ;;  %v4130_v0 = vpop.permute.xlu0 %4129  ;;  %v4136_v6 = vunpack.i.l.bf16 %v4135_v33  ;;  %s4560_s10 = smov [#allocation10]  }
 0x252   : > { %v4131_v44 = vunpack.i.l.bf16 %v4130_v0  ;;  %v4132_v49 = vunpack.i.h.bf16 %v4130_v0 }
 0x255   : > { %4279 = vrot.lane.b32.xlu1 %v4278_v32, %s4556_s11  ;;  %4269 = vrot.lane.b32.xlu0 %v4218_v28, %s4557_s28  ;;  %v4140_v34 = vpop.permute.xlu0 %4139  ;;  %s4476_s11 = sshll.u32 %s4560_s10, 4  ;;  %s4477_s11 = int_to_ptr.vmem [resolvable:$false] %s4476_s11 }
 0x256   : > { %v4142_v61 = vunpack.i.h.bf16 %v4140_v34  ;;  %v4141_v62 = vunpack.i.l.bf16 %v4140_v34  ;;  %p4479_p7 = scmp.lt.s32.totalorder %s5544_s24, %s4477_s11 }
 0x259   : > { %4284 = vrot.lane.b32.xlu1 %v4223_v22, %s4557_s28  ;;  %4289 = vrot.lane.b32.xlu0 %v5162_v4, %s4557_s28 }
 0x25d   : > { %4294 = vrot.lane.b32.xlu1 %v4253_v30, %s4557_s28  ;;  %4304 = vrot.lane.b32.xlu0 %v4218_v28, %s4558_s30 }
 0x261   : > { %4299 = vrot.lane.b32.xlu1 %v4263_v20, %s4557_s28  ;;  %4314 = vrot.lane.b32.xlu0 %v4278_v32, %s4557_s28  ;;  %s4478_s28 = scalar_lea.vmem %s4477_s11, 2048 }
 0x262   : > { %p4480_p9 = scmp.lt.s32.totalorder %s4478_s28, %s4472_s8 }
 0x264   : > { %p4481_p12 = por %p4480_p9, %p4479_p7 }
 0x265   : > { %4309 = vrot.lane.b32.xlu1 %v4223_v22, %s4558_s30  ;;  %4319 = vrot.lane.b32.xlu0 %v4218_v28, %s4559_s15 }
 0x266   : > { %p4482_p2 = pnand %p4481_p12, %p4475_p3 }
 0x269   : > { %4324 = vrot.lane.b32.xlu1 %v4223_v22, %s4559_s15  ;;  %4329 = vrot.lane.b32.xlu0 %v5162_v4, %s4558_s30 }
 0x26d   : > { %4334 = vrot.lane.b32.xlu1 %v5162_v4, %s4559_s15  ;;  %4339 = vrot.lane.b32.xlu0 %v4253_v30, %s4558_s30 }
 0x271   : > { %4354 = vrot.lane.b32.xlu1 %v4278_v32, %s4558_s30  ;;  %4344 = vrot.lane.b32.xlu0 %v4253_v30, %s4559_s15 }
 0x275   : > { %4359 = vrot.lane.b32.xlu1 %v4278_v32, %s4559_s15  ;;  %4349 = vrot.lane.b32.xlu0 %v4263_v20, %s4558_s30 }
 0x279   : > { %4364 = vrot.lane.b32.xlu1 %v4263_v20, %s4559_s15  ;;  %v4137_v20 = vunpack.i.h.bf16 %v4135_v33  ;;  %v4147_v33 = vunpack.i.h.bf16 %v5244_v35 }
 0x293   : > { %v4150_v36 = vpop.permute.xlu0 %4149 }
 0x294   : > { %v4152_v40 = vunpack.i.h.bf16 %v4150_v36  ;;  %v4151_v43 = vunpack.i.l.bf16 %v4150_v36 }
 0x296   : > { %v1852_v53 = vsel %vm315_vm0, %v4131_v44, %v4151_v43  ;;  %v1853_v54 = vsel %vm315_vm0, %v4151_v43, %v4152_v40 }
 0x297   : > { %v4155_v46 = vpop.permute.xlu0 %4154  ;;  %v4165_v47 = vpop.permute.xlu1 %4164 }
 0x298   : > { %v4167_v51 = vunpack.i.h.bf16 %v4165_v47  ;;  %v4166_v52 = vunpack.i.l.bf16 %v4165_v47  ;;  %v4157_v55 = vunpack.i.h.bf16 %v4155_v46  ;;  %v4156_v56 = vunpack.i.l.bf16 %v4155_v46 }
 0x29a   : > { %v1854_v57 = vsel %vm315_vm0, %v4132_v49, %v4166_v52  ;;  %v1855_v48 = vsel %vm315_vm0, %v4166_v52, %v4167_v51  ;;  %v2006_v12 = vsel %vm404_vm1, %v4141_v62, %v4156_v56  ;;  %v2007_v1 = vsel %vm404_vm1, %v4156_v56, %v4157_v55  ;;  %v1812_v55 = vld [vmem:[#allocation9] sm:$0xff] }
 0x29b   : > { %v3624_v2 = vpack.c.bf16 %v1854_v57, %v1852_v53  ;;  %v4160_v5 = vpop.permute.xlu0 %4159  ;;  %v4170_v23 = vpop.permute.xlu1 %4169  ;;  %v3622_v60 = vpack.c.bf16 %v1855_v48, %v1853_v54  ;;  %v4146_v52 = vunpack.i.l.bf16 %v5244_v35 }
 0x29c   : > { %v4172_v63 = vunpack.i.h.bf16 %v4170_v23  ;;  %v4171_v4 = vunpack.i.l.bf16 %v4170_v23  ;;  %v4162_v26 = vunpack.i.h.bf16 %v4160_v5  ;;  %v4161_v22 = vunpack.i.l.bf16 %v4160_v5  ;;  %v1813_v5 = vld [vmem:[#allocation9 + $0x8] sm:$0xff] }
 0x29d   : > { %3623 = vmatprep.subr.bf16.mxu1 %v3622_v60 }
 0x29e   : > { %v2008_v11 = vsel %vm404_vm1, %v4142_v61, %v4171_v4  ;;  %3625 = vmatpush1.bf16.msra.mxu1 %v3624_v2  ;;  %v2009_v13 = vsel %vm404_vm1, %v4171_v4, %v4172_v63  ;;  %v2161_v51 = vsel %vm697_vm2, %v4161_v22, %v4162_v26  ;;  %v2160_v56 = vsel %vm697_vm2, %v4146_v52, %v4161_v22 }
 0x29f   : > { %v3632_v25 = vpack.c.bf16 %v2008_v11, %v2006_v12  ;;  %v4175_v14 = vpop.permute.xlu1 %4174  ;;  %v5254_v16 = vpop.permute.xlu0 %4184  ;;  %v3630_v3 = vpack.c.bf16 %v2009_v13, %v2007_v1 }
 0x2a0   : > { %v4177_v17 = vunpack.i.h.bf16 %v4175_v14  ;;  %v4176_v24 = vunpack.i.l.bf16 %v4175_v14  ;;  %v4187_v35 = vunpack.i.h.bf16 %v5254_v16  ;;  %v4186_v23 = vunpack.i.l.bf16 %v5254_v16 }
 0x2a1   : > { %3631 = vmatprep.subr.bf16.mxu0 %v3630_v3 }
 0x2a2   : > { %3633 = vmatpush1.bf16.msra.mxu0 %v3632_v25  ;;  %v2163_v0 = vsel %vm697_vm2, %v4176_v24, %v4177_v17  ;;  %v2162_v53 = vsel %vm697_vm2, %v4147_v33, %v4176_v24  ;;  %v1814_v25 = vld [vmem:[#allocation9 + $0x10] sm:$0xff]  ;;  %v2011_v17 = vsel %vm404_vm1, %v4186_v23, %v4187_v35 }
 0x2a3   : > { %v4180_v27 = vpop.permute.xlu1 %4179  ;;  %v4190_v28 = vpop.permute.xlu0 %4189  ;;  %v3638_v54 = vpack.c.bf16 %v2163_v0, %v2161_v51  ;;  %v3640_v2 = vpack.c.bf16 %v2162_v53, %v2160_v56 }
 0x2a4   : > { %v4182_v29 = vunpack.i.h.bf16 %v4180_v27  ;;  %v4181_v30 = vunpack.i.l.bf16 %v4180_v27  ;;  %v4192_v31 = vunpack.i.h.bf16 %v4190_v28  ;;  %v4191_v32 = vunpack.i.l.bf16 %v4190_v28 }
 0x2a6   : > { %v1856_v34 = vsel %vm315_vm0, %v4136_v6, %v4181_v30  ;;  %v1858_v36 = vsel %vm315_vm0, %v4137_v20, %v4191_v32  ;;  %v1857_v40 = vsel %vm315_vm0, %v4181_v30, %v4182_v29  ;;  %v1859_v43 = vsel %vm315_vm0, %v4191_v32, %v4192_v31 }
 0x2a7   : > { %v3628_v44 = vpack.c.bf16 %v1858_v36, %v1856_v34  ;;  %v5262_v46 = vpop.permute.xlu1 %4204  ;;  %v5264_v47 = vpop.permute.xlu0 %4194  ;;  %v3626_v49 = vpack.c.bf16 %v1859_v43, %v1857_v40  ;;  %v1815_v34 = vld [vmem:[#allocation9 + $0x18] sm:$0xff] }
 0x2a8   : > { %v4206_v62 = vunpack.i.l.bf16 %v5262_v46  ;;  %v4196_v63 = vunpack.i.l.bf16 %v5264_v47  ;;  %v4207_v14 = vunpack.i.h.bf16 %v5262_v46  ;;  %v4197_v24 = vunpack.i.h.bf16 %v5264_v47 }
 0x2a9   : > { %3627 = vmatprep.subr.bf16.mxu1 %v3626_v49 }
 0x2aa   : > { %3629 = vmatpush1.bf16.msra.mxu1 %v3628_v44  ;;  %v2164_v22 = vsel %vm697_vm2, %v4206_v62, %v4196_v63 }
 0x2ab   : > { %v4215_v57 = vpop.permute.xlu1 %4214  ;;  %v4200_v48 = vpop.permute.xlu0 %4199  ;;  %3639 = vmatprep.subr.bf16.mxu1 %v3638_v54  ;;  %v2165_v54 = vsel %vm697_vm2, %v4196_v63, %v4197_v24 }
 0x2ac   : > { %v4201_v4 = vunpack.i.l.bf16 %v4200_v48  ;;  %v4217_v12 = vunpack.i.h.bf16 %v4215_v57  ;;  %v4216_v11 = vunpack.i.l.bf16 %v4215_v57  ;;  %v4202_v20 = vunpack.i.h.bf16 %v4200_v48 }
 0x2ad   : > { %3507 = vmatmul.mubr.msk.f32.vlgmr.msra.gmra.mrb[16].mxu1 %vm404_vm1, %v1812_v55 }
 0x2ae   : > { %3641 = vmatpush1.bf16.msra.mxu1 %v3640_v2  ;;  %1950 = vmatprep.mubr.f32.mxu1 %v5088_v37  ;;  %v2010_v27 = vsel %vm404_vm1, %v4201_v4, %v4186_v23  ;;  %v2325_v0 = vsel %vm860_vm3, %v4216_v11, %v4217_v12  ;;  %v1978_v2 = vld [vmem:[#allocation9 + $0x20] sm:$0xff] }
 0x2af   : > { %v5274_v60 = vpop.permute.xlu1 %4224  ;;  %v4210_v61 = vpop.permute.xlu0 %4209 }
 0x2b0   : > { %v4212_v1 = vunpack.i.h.bf16 %v4210_v61  ;;  %v4211_v13 = vunpack.i.l.bf16 %v4210_v61  ;;  %v4227_v36 = vunpack.i.h.bf16 %v5274_v60  ;;  %v4226_v40 = vunpack.i.l.bf16 %v5274_v60 }
 0x2b1   : > { %3508 = vmatmul.mubr.msk.f32.gmra.mrb[18].mxu1 %vm404_vm1, %v1813_v5 }
 0x2b2   : > { %1956 = vmatprep.mubr.f32.mxu1 %v5088_v37  ;;  %v2323_v32 = vsel %vm860_vm3, %v4211_v13, %v4212_v1  ;;  %v2625_v12 = vsel %vm1161_vm4, %v4226_v40, %v4227_v36 }
 0x2b3   : > { %v4235_v16 = vpop.permute.xlu1 %4234  ;;  %v4220_v3 = vpop.permute.xlu0 %4219  ;;  %v3646_v53 = vpack.c.bf16 %v2325_v0, %v2323_v32 }
 0x2b4   : > { %v4237_v6 = vunpack.i.h.bf16 %v4235_v16  ;;  %v4236_v26 = vunpack.i.l.bf16 %v4235_v16  ;;  %v4222_v28 = vunpack.i.h.bf16 %v4220_v3  ;;  %v4221_v29 = vunpack.i.l.bf16 %v4220_v3 }
 0x2b5   : > { %3509 = vmatmul.mubr.msk.f32.gmra.mrb[20].mxu1 %vm404_vm1, %v1814_v25  ;;  %v1979_v25 = vld [vmem:[#allocation9 + $0x28] sm:$0xff] }
 0x2b6   : > { %v2012_v30 = vsel %vm404_vm1, %v4202_v20, %v4236_v26  ;;  %v2013_v31 = vsel %vm404_vm1, %v4236_v26, %v4237_v6  ;;  %1962 = vmatprep.mubr.f32.mxu1 %v5088_v37  ;;  %v2623_v55 = vsel %vm1161_vm4, %v4221_v29, %v4222_v28  ;;  %v1980_v6 = vld [vmem:[#allocation9 + $0x30] sm:$0xff]  ;;  %v2133_v26 = vld [vmem:[#allocation9 + $0x48] sm:$0xff] }
 0x2b7   : > { %v3636_v43 = vpack.c.bf16 %v2012_v30, %v2010_v27  ;;  %v4240_v33 = vpop.permute.xlu1 %4239  ;;  %v4230_v44 = vpop.permute.xlu0 %4229  ;;  %v3634_v46 = vpack.c.bf16 %v2013_v31, %v2011_v17 }
 0x2b8   : > { %v4242_v47 = vunpack.i.h.bf16 %v4240_v33  ;;  %v4241_v49 = vunpack.i.l.bf16 %v4240_v33  ;;  %v4232_v51 = vunpack.i.h.bf16 %v4230_v44  ;;  %v4231_v52 = vunpack.i.l.bf16 %v4230_v44  ;;  %v1981_v33 = vld [vmem:[#allocation9 + $0x38] sm:$0xff]  ;;  %v2134_v44 = vld [vmem:[#allocation9 + $0x50] sm:$0xff] }
 0x2b9   : > { %3635 = vmatprep.subr.bf16.mxu0 %v3634_v46  ;;  %3510 = vmatmul.mubr.msk.f32.gmra.mrb[22].mxu1 %vm404_vm1, %v1815_v34 }
 0x2ba   : > { %v2166_v56 = vsel %vm697_vm2, %v4207_v14, %v4241_v49  ;;  %v2324_v57 = vsel %vm860_vm3, %v4232_v51, %v4216_v11  ;;  %v2322_v48 = vsel %vm860_vm3, %v4231_v52, %v4211_v13  ;;  %3637 = vmatpush1.bf16.msra.mxu0 %v3636_v43  ;;  %v2167_v5 = vsel %vm697_vm2, %v4241_v49, %v4242_v47  ;;  %v2132_v14 = vld [vmem:[#allocation9 + $0x40] sm:$0xff] }
 0x2bb   : > { %v3644_v35 = vpack.c.bf16 %v2166_v56, %v2164_v22  ;;  %v3648_v23 = vpack.c.bf16 %v2324_v57, %v2322_v48  ;;  %v4245_v60 = vpop.permute.xlu1 %4244  ;;  %v4250_v61 = vpop.permute.xlu0 %4249  ;;  %3647 = vmatprep.subr.bf16.mxu0 %v3646_v53  ;;  %v3642_v62 = vpack.c.bf16 %v2167_v5, %v2165_v54  ;;  %2252 = vmatprep.mubr.f32.mxu1 %v5088_v37  ;;  %v2135_v5 = vld [vmem:[#allocation9 + $0x58] sm:$0xff] }
 0x2bc   : > { %v4247_v63 = vunpack.i.h.bf16 %v4245_v60  ;;  %v4246_v4 = vunpack.i.l.bf16 %v4245_v60  ;;  %v3662_v11 = vpack.c.bf16 %v2625_v12, %v2623_v55  ;;  %v4252_v24 = vunpack.i.h.bf16 %v4250_v61 }
 0x2bd   : > { %3511 = vmatmul.mubr.msk.f32.vlgmr.msra.gmra.mrb[40].mxu0 %vm404_vm1, %v1978_v2  ;;  %3643 = vmatprep.subr.bf16.mxu1 %v3642_v62  ;;  %v4251_v20 = vunpack.i.l.bf16 %v4250_v61 }
 0x2be   : > { %v2624_v1 = vsel %vm1161_vm4, %v4247_v63, %v4226_v40  ;;  %v2622_v13 = vsel %vm1161_vm4, %v4246_v4, %v4221_v29  ;;  %3645 = vmatpush1.bf16.msra.mxu1 %v3644_v35  ;;  %3649 = vmatpush1.bf16.msra.mxu0 %v3648_v23  ;;  %v2294_v63 = vld [vmem:[#allocation9 + $0x60] sm:$0xff] }
 0x2bf   : > { %v3664_v16 = vpack.c.bf16 %v2624_v1, %v2622_v13  ;;  %v4265_v3 = vpop.permute.xlu1 %4264  ;;  %v4255_v17 = vpop.permute.xlu0 %4254  ;;  %3663 = vmatprep.subr.bf16.mxu1 %v3662_v11  ;;  %2104 = vmatprep.mubr.f32.mxu0 %v5088_v37  ;;  %v2327_v34 = vsel %vm860_vm3, %v4251_v20, %v4252_v24 }
 0x2c0   : > { %v4266_v32 = vunpack.i.l.bf16 %v4265_v3  ;;  %v4256_v0 = vunpack.i.l.bf16 %v4255_v17  ;;  %v4257_v36 = vunpack.i.h.bf16 %v4255_v17  ;;  %v4267_v53 = vunpack.i.h.bf16 %v4265_v3  ;;  %v2582_v3 = vld [vmem:[#allocation9 + $0xa0] sm:$0xff] }
 0x2c1   : > { %3512 = vmatmul.mubr.msk.f32.gmra.mrb[42].mxu0 %vm404_vm1, %v1979_v25  ;;  %3515 = vmatmul.mubr.msk.f32.vlgmr.msra.gmra.mrb[24].mxu1 %vm404_vm1, %v2132_v14 }
 0x2c2   : > { %3665 = vmatpush1.bf16.msra.mxu1 %v3664_v16  ;;  %2110 = vmatprep.mubr.f32.mxu0 %v5088_v37  ;;  %v2626_v56 = vsel %vm1161_vm4, %v4266_v32, %v4256_v0  ;;  %v2627_v35 = vsel %vm1161_vm4, %v4256_v0, %v4257_v36  ;;  %v2297_v36 = vld [vmem:[#allocation9 + $0x78] sm:$0xff] }
 0x2c3   : > { %v4275_v22 = vpop.permute.xlu1 %4274  ;;  %v4260_v27 = vpop.permute.xlu0 %4259  ;;  %2258 = vmatprep.mubr.f32.mxu1 %v5088_v37 }
 0x2c4   : > { %v4277_v28 = vunpack.i.h.bf16 %v4275_v22  ;;  %v4276_v29 = vunpack.i.l.bf16 %v4275_v22  ;;  %v4262_v30 = vunpack.i.h.bf16 %v4260_v27  ;;  %v4261_v31 = vunpack.i.l.bf16 %v4260_v27 }
 0x2c5   : > { %3513 = vmatmul.mubr.msk.f32.gmra.mrb[44].mxu0 %vm404_vm1, %v1980_v6  ;;  %3516 = vmatmul.mubr.msk.f32.gmra.mrb[26].mxu1 %vm404_vm1, %v2133_v26 }
 0x2c6   : > { %v2328_v40 = vsel %vm860_vm3, %v4262_v30, %v4276_v29  ;;  %v2326_v43 = vsel %vm860_vm3, %v4261_v31, %v4251_v20  ;;  %2116 = vmatprep.mubr.f32.mxu0 %v5088_v37  ;;  %2264 = vmatprep.mubr.f32.mxu1 %v5088_v37  ;;  %v2329_v46 = vsel %vm860_vm3, %v4276_v29, %v4277_v28  ;;  %v2584_v30 = vld [vmem:[#allocation9 + $0xb0] sm:$0xff] }
 0x2c7   : > { %v3652_v47 = vpack.c.bf16 %v2328_v40, %v2326_v43  ;;  %v4280_v49 = vpop.permute.xlu1 %4279  ;;  %v4270_v51 = vpop.permute.xlu0 %4269  ;;  %v3650_v52 = vpack.c.bf16 %v2329_v46, %v2327_v34 }
 0x2c8   : > { %v4282_v54 = vunpack.i.h.bf16 %v4280_v49  ;;  %v4281_v55 = vunpack.i.l.bf16 %v4280_v49  ;;  %v4272_v57 = vunpack.i.h.bf16 %v4270_v51  ;;  %v4271_v48 = vunpack.i.l.bf16 %v4270_v51 }
 0x2c9   : > { %3514 = vmatmul.mubr.msk.f32.gmra.mrb[46].mxu0 %vm404_vm1, %v1981_v33  ;;  %3517 = vmatmul.mubr.msk.f32.gmra.mrb[28].mxu1 %vm404_vm1, %v2134_v44 }
 0x2ca   : > { %v2628_v2 = vsel %vm1161_vm4, %v4267_v53, %v4281_v55  ;;  %3651 = vmatprep.subr.bf16.mxu0 %v3650_v52  ;;  %2270 = vmatprep.mubr.f32.mxu1 %v5088_v37  ;;  %v2629_v23 = vsel %vm1161_vm4, %v4281_v55, %v4282_v54  ;;  %v2785_v25 = vsel %vm1324_vm5, %v4271_v48, %v4272_v57  ;;  %v2456_v55 = vld [vmem:[#allocation9 + $0x80] sm:$0xff] }
 0x2cb   : > { %v3668_v60 = vpack.c.bf16 %v2628_v2, %v2626_v56  ;;  %3653 = vmatpush1.bf16.msra.mxu0 %v3652_v47  ;;  %v4285_v61 = vpop.permute.xlu1 %4284  ;;  %v4290_v62 = vpop.permute.xlu0 %4289  ;;  %2414 = vmatprep.mubr.f32.mxu0 %v5088_v37  ;;  %v3666_v4 = vpack.c.bf16 %v2629_v23, %v2627_v35  ;;  %v2585_v47 = vld [vmem:[#allocation9 + $0xb8] sm:$0xff] }
 0x2cc   : > { %v4287_v12 = vunpack.i.h.bf16 %v4285_v61  ;;  %v4286_v11 = vunpack.i.l.bf16 %v4285_v61  ;;  %v4292_v1 = vunpack.i.h.bf16 %v4290_v62  ;;  %v4291_v13 = vunpack.i.l.bf16 %v4290_v62  ;;  %3655 = vmatprep.subr.bf16.mxu0 %v3654_v7  ;;  %v2295_v7 = vld [vmem:[#allocation9 + $0x68] sm:$0xff] }
 0x2cd   : > { %3518 = vmatmul.mubr.msk.f32.gmra.mrb[30].mxu1 %vm404_vm1, %v2135_v5  ;;  %3667 = vmatprep.subr.bf16.mxu1 %v3666_v4 }
 0x2ce   : > { %v2786_v14 = vsel %vm1324_vm5, %v4292_v1, %v4286_v11  ;;  %v2784_v16 = vsel %vm1324_vm5, %v4291_v13, %v4271_v48  ;;  %3519 = vmatmul.mubr.msk.f32.vlgmr.msra.gmra.mrb[48].mxu0 %vm404_vm1, %v2294_v63  ;;  %3669 = vmatpush1.bf16.msra.mxu1 %v3668_v60  ;;  %v2787_v17 = vsel %vm1324_vm5, %v4286_v11, %v4287_v12  ;;  %v5373_v60 = vld [vmem:[#allocation2] sm:$0xff]  ;;  %v2457_v11 = vld [vmem:[#allocation9 + $0x88] sm:$0xff] }
 0x2cf   : > { %v3672_v24 = vpack.c.bf16 %v2786_v14, %v2784_v16  ;;  %3657 = vmatpush1.bf16.msra.mxu0 %v3656_v8  ;;  %v4295_v50 = vpop.permute.xlu1 %4294  ;;  %v5338_v59 = vpop.permute.xlu0 %4304  ;;  %2420 = vmatprep.mubr.f32.mxu0 %v5088_v37  ;;  %v3670_v20 = vpack.c.bf16 %v2787_v17, %v2785_v25  ;;  %v2757_v17 = vld [vmem:[#allocation9 + $0xc8] sm:$0xff] }
 0x2d0   : > { %3659 = vmatprep.subr.bf16.mxu0 %v3658_v9  ;;  %2714 = vmatprep.mubr.f32.mxu1 %v5088_v37  ;;  %v4297_v6 = vunpack.i.h.bf16 %v4295_v50  ;;  %v4296_v26 = vunpack.i.l.bf16 %v4295_v50  ;;  %v4307_v28 = vunpack.i.h.bf16 %v5338_v59  ;;  %v4306_v10 = vunpack.i.l.bf16 %v5338_v59 }
 0x2d1   : > { %3527 = vmatmul.mubr.msk.f32.vlgmr.msra.gmra.mrb[32].mxu1 %vm404_vm1, %v2582_v3  ;;  %3671 = vmatprep.subr.bf16.mxu1 %v3670_v20 }
 0x2d2   : > { %3520 = vmatmul.mubr.msk.f32.gmra.mrb[50].mxu0 %vm404_vm1, %v2295_v7  ;;  %3673 = vmatpush1.bf16.msra.mxu1 %v3672_v24  ;;  %v2789_v29 = vsel %vm1324_vm5, %v4296_v26, %v4297_v6  ;;  %v2947_v49 = vsel %vm1487_vm6, %v4306_v10, %v4307_v28  ;;  %v2458_v7 = vld [vmem:[#allocation9 + $0x90] sm:$0xff] }
 0x2d3   : > { %3661 = vmatpush1.bf16.msra.mxu0 %v3660_v21  ;;  %v4300_v58 = vpop.permute.xlu1 %4299  ;;  %v4315_v8 = vpop.permute.xlu0 %4314  ;;  %2426 = vmatprep.mubr.f32.mxu0 %v5088_v37 }
 0x2d4   : > { %v4302_v19 = vunpack.i.h.bf16 %v4300_v58  ;;  %v4301_v9 = vunpack.i.l.bf16 %v4300_v58  ;;  %v4317_v22 = vunpack.i.h.bf16 %v4315_v8  ;;  %v4316_v27 = vunpack.i.l.bf16 %v4315_v8  ;;  %2720 = vmatprep.mubr.f32.mxu1 %v5088_v37  ;;  %v2758_v58 = vld [vmem:[#allocation9 + $0xd0] sm:$0xff] }
 0x2d5   : > { %3528 = vmatmul.mubr.msk.f32.gmra.mrb[34].mxu1 %vm404_vm1, %v2583_v45 }
 0x2d6   : > { %v2788_v18 = vsel %vm1324_vm5, %v4301_v9, %v4296_v26  ;;  %v2790_v21 = vsel %vm1324_vm5, %v4302_v19, %v4316_v27  ;;  %3521 = vmatmul.mubr.msk.f32.gmra.mrb[52].mxu0 %vm404_vm1, %v2296_v15  ;;  %2726 = vmatprep.mubr.f32.mxu1 %v5088_v37  ;;  %v2791_v31 = vsel %vm1324_vm5, %v4316_v27, %v4317_v22  ;;  %v2459_v27 = vld [vmem:[#allocation9 + $0x98] sm:$0xff] }
 0x2d7   : > { %v3676_v32 = vpack.c.bf16 %v2790_v21, %v2788_v18  ;;  %v4310_v0 = vpop.permute.xlu1 %4309  ;;  %v4320_v34 = vpop.permute.xlu0 %4319  ;;  %2432 = vmatprep.mubr.f32.mxu0 %v5088_v37  ;;  %v3674_v40 = vpack.c.bf16 %v2791_v31, %v2789_v29 }
 0x2d8   : > { %v4312_v43 = vunpack.i.h.bf16 %v4310_v0  ;;  %v4311_v33 = vunpack.i.l.bf16 %v4310_v0  ;;  %v4322_v44 = vunpack.i.h.bf16 %v4320_v34  ;;  %v4321_v46 = vunpack.i.l.bf16 %v4320_v34 }
 0x2d9   : > { %3529 = vmatmul.mubr.msk.f32.gmra.mrb[36].mxu1 %vm404_vm1, %v2584_v30  ;;  %3675 = vmatprep.subr.bf16.mxu1 %v3674_v40 }
 0x2da   : > { %3522 = vmatmul.mubr.msk.f32.gmra.mrb[54].mxu0 %vm404_vm1, %v2297_v36  ;;  %3677 = vmatpush1.bf16.msra.mxu1 %v3676_v32  ;;  %v2949_v51 = vsel %vm1487_vm6, %v4311_v33, %v4312_v43  ;;  %v3101_v5 = vsel %vm1642_vm7, %v4321_v46, %v4322_v44  ;;  %v2759_v32 = vld [vmem:[#allocation9 + $0xd8] sm:$0xff]  ;;  %v2918_v44 = vld [vmem:[#allocation9 + $0xe0] sm:$0xff] }
 0x2db   : > { %v4325_v52 = vpop.permute.xlu1 %4324  ;;  %v4330_v53 = vpop.permute.xlu0 %4329  ;;  %2732 = vmatprep.mubr.f32.mxu1 %v5088_v37  ;;  %v3678_v54 = vpack.c.bf16 %v2949_v51, %v2947_v49  ;;  %2536 = vmatprep.mubr.f32.mxu0 %v5088_v37  ;;  %v2756_v37 = vld [vmem:[#allocation9 + $0xc0] sm:$0xff]  ;;  %v2919_v51 = vld [vmem:[#allocation9 + $0xe8] sm:$0xff] }
 0x2dc   : > { %v4327_v56 = vunpack.i.h.bf16 %v4325_v52  ;;  %v4326_v57 = vunpack.i.l.bf16 %v4325_v52  ;;  %v4332_v48 = vunpack.i.h.bf16 %v4330_v53  ;;  %v4331_v2 = vunpack.i.l.bf16 %v4330_v53  ;;  %v3072_v52 = vld [vmem:[#allocation9 + $0x100] sm:$0xff]  ;;  %v2920_v53 = vld [vmem:[#allocation9 + $0xf0] sm:$0xff] }
 0x2dd   : > { %3530 = vmatmul.mubr.msk.f32.gmra.mrb[38].mxu1 %vm404_vm1, %v2585_v47  ;;  %3679 = vmatprep.subr.bf16.mxu0 %v3678_v54  ;;  %v3073_v54 = vld [vmem:[#allocation9 + $0x108] sm:$0xff] }
 0x2de   : > { %v2948_v35 = vsel %vm1487_vm6, %v4332_v48, %v4311_v33  ;;  %v2946_v23 = vsel %vm1487_vm6, %v4331_v2, %v4306_v10  ;;  %3523 = vmatmul.mubr.msk.f32.vlgmr.msra.gmra.mrb[40].mxu0 %vm404_vm1, %v2456_v55  ;;  %2876 = vmatprep.mubr.f32.mxu1 %v5373_v60  ;;  %v3103_v61 = vsel %vm1642_vm7, %v4326_v57, %v4327_v56  ;;  %v2921_v55 = vld [vmem:[#allocation9 + $0xf8] sm:$0xff]  ;;  %v3074_v56 = vld [vmem:[#allocation9 + $0x110] sm:$0xff] }
 0x2df   : > { %v3680_v62 = vpack.c.bf16 %v2948_v35, %v2946_v23  ;;  %v4335_v63 = vpop.permute.xlu1 %4334  ;;  %v4340_v4 = vpop.permute.xlu0 %4339  ;;  %v3686_v12 = vpack.c.bf16 %v3103_v61, %v3101_v5  ;;  %2542 = vmatprep.mubr.f32.mxu0 %v5373_v60 }
 0x2e0   : > { %v4337_v1 = vunpack.i.h.bf16 %v4335_v63  ;;  %v4336_v13 = vunpack.i.l.bf16 %v4335_v63  ;;  %v4342_v16 = vunpack.i.h.bf16 %v4340_v4  ;;  %v4341_v3 = vunpack.i.l.bf16 %v4340_v4 }
 0x2e1   : > { %3531 = vmatmul.mubr.msk.f32.vlgmr.msra.gmra.mrb[40].mxu1 %vm404_vm1, %v2756_v37  ;;  %3681 = vmatpush1.bf16.msra.mxu0 %v3680_v62 }
 0x2e2   : > { %v3100_v25 = vsel %vm1642_vm7, %v4336_v13, %v4321_v46  ;;  %v3102_v14 = vsel %vm1642_vm7, %v4337_v1, %v4326_v57  ;;  %3687 = vmatprep.subr.bf16.mxu1 %v3686_v12  ;;  %3524 = vmatmul.mubr.msk.f32.gmra.mrb[42].mxu0 %vm404_vm1, %v2457_v11  ;;  %v2951_v8 = vsel %vm1487_vm6, %v4341_v3, %v4342_v16  ;;  %v3075_v57 = vld [vmem:[#allocation9 + $0x118] sm:$0xff] }
 0x2e3   : > { %v3688_v24 = vpack.c.bf16 %v3102_v14, %v3100_v25  ;;  %v4355_v50 = vpop.permute.xlu1 %4354  ;;  %v4345_v59 = vpop.permute.xlu0 %4344  ;;  %2882 = vmatprep.mubr.f32.mxu1 %v5373_v60  ;;  %2548 = vmatprep.mubr.f32.mxu0 %v5373_v60 }
 0x2e4   : > { %v4357_v20 = vunpack.i.h.bf16 %v4355_v50  ;;  %v4356_v6 = vunpack.i.l.bf16 %v4355_v50  ;;  %v4347_v26 = vunpack.i.h.bf16 %v4345_v59  ;;  %v4346_v45 = vunpack.i.l.bf16 %v4345_v59 }
 0x2e5   : > { %3532 = vmatmul.mubr.msk.f32.gmra.mrb[42].mxu1 %vm404_vm1, %v2757_v17 }
 0x2e6   : > { %3689 = vmatpush1.bf16.msra.mxu1 %v3688_v24  ;;  %3525 = vmatmul.mubr.msk.f32.gmra.mrb[44].mxu0 %vm404_vm1, %v2458_v7  ;;  %v2953_v15 = vsel %vm1487_vm6, %v4356_v6, %v4357_v20  ;;  %v3105_v21 = vsel %vm1642_vm7, %v4346_v45, %v4347_v26 }
 0x2e7   : > { %v4360_v19 = vpop.permute.xlu1 %4359  ;;  %v4350_v9 = vpop.permute.xlu0 %4349  ;;  %2888 = vmatprep.mubr.f32.mxu1 %v5373_v60  ;;  %v3682_v22 = vpack.c.bf16 %v2953_v15, %v2951_v8  ;;  %2554 = vmatprep.mubr.f32.mxu0 %v5373_v60 }
 0x2e8   : > { %v4362_v28 = vunpack.i.h.bf16 %v4360_v19  ;;  %v4361_v29 = vunpack.i.l.bf16 %v4360_v19  ;;  %v4352_v10 = vunpack.i.h.bf16 %v4350_v9  ;;  %v4351_v18 = vunpack.i.l.bf16 %v4350_v9 }
 0x2e9   : > { %3533 = vmatmul.mubr.msk.f32.gmra.mrb[44].mxu1 %vm404_vm1, %v2758_v58  ;;  %3683 = vmatprep.subr.bf16.mxu0 %v3682_v22 }
 0x2ea   : > { %v2952_v30 = vsel %vm1487_vm6, %v4352_v10, %v4356_v6  ;;  %v2950_v31 = vsel %vm1487_vm6, %v4351_v18, %v4341_v3  ;;  %3526 = vmatmul.mubr.msk.f32.gmra.mrb[46].mxu0 %vm404_vm1, %v2459_v27  ;;  %2894 = vmatprep.mubr.f32.mxu1 %v5373_v60  ;;  %v3107_v0 = vsel %vm1642_vm7, %v4361_v29, %v4362_v28 }
 0x2eb   : > { %v3684_v34 = vpack.c.bf16 %v2952_v30, %v2950_v31  ;;  %v4365_v36 = vpop.permute.xlu1 %4364  ;;  %v3690_v40 = vpack.c.bf16 %v3107_v0, %v3105_v21  ;;  %3038 = vmatprep.mubr.f32.mxu0 %v5373_v60 }
 0x2ec   : > { %v4367_v43 = vunpack.i.h.bf16 %v4365_v36  ;;  %v4366_v33 = vunpack.i.l.bf16 %v4365_v36 }
 0x2ed   : > { %3534 = vmatmul.mubr.msk.f32.gmra.mrb[46].mxu1 %vm404_vm1, %v2759_v32  ;;  %3685 = vmatpush1.bf16.msra.mxu0 %v3684_v34 }
 0x2ee   : > { %v3104_v46 = vsel %vm1642_vm7, %v4366_v33, %v4346_v45  ;;  %v3106_v47 = vsel %vm1642_vm7, %v4367_v43, %v4361_v29  ;;  %3691 = vmatprep.subr.bf16.mxu1 %v3690_v40  ;;  %3192 = vmatprep.mubr.f32.mxu1 %v5373_v60 }
 0x2ef   : > { %v3692_v49 = vpack.c.bf16 %v3106_v47, %v3104_v46 }
 0x2f0   : > { %3535 = vmatmul.mubr.msk.f32.vlgmr.msra.gmra.mrb[40].mxu0 %vm404_vm1, %v2918_v44 }
 0x2f1   : > { %3693 = vmatpush1.bf16.msra.mxu1 %v3692_v49  ;;  %3044 = vmatprep.mubr.f32.mxu0 %v5373_v60 }
 0x2f4   : > { %3536 = vmatmul.mubr.msk.f32.gmra.mrb[42].mxu0 %vm404_vm1, %v2919_v51  ;;  %3539 = vmatmul.mubr.msk.f32.vlgmr.msra.gmra.mrb[48].mxu1 %vm404_vm1, %v3072_v52 }
 0x2f5   : > { %3050 = vmatprep.mubr.f32.mxu0 %v5373_v60  ;;  %3198 = vmatprep.mubr.f32.mxu1 %v5373_v60 }
 0x2f8   : > { %3537 = vmatmul.mubr.msk.f32.gmra.mrb[44].mxu0 %vm404_vm1, %v2920_v53  ;;  %3540 = vmatmul.mubr.msk.f32.gmra.mrb[50].mxu1 %vm404_vm1, %v3073_v54 }
 0x2f9   : > { %3056 = vmatprep.mubr.f32.mxu0 %v5373_v60  ;;  %3204 = vmatprep.mubr.f32.mxu1 %v5373_v60 }
 0x2fc   : > { %3538 = vmatmul.mubr.msk.f32.gmra.mrb[46].mxu0 %vm404_vm1, %v2921_v55  ;;  %3541 = vmatmul.mubr.msk.f32.gmra.mrb[52].mxu1 %vm404_vm1, %v3074_v56 }
 0x2fd   : > { %3210 = vmatprep.mubr.f32.mxu1 %v5373_v60 }
 0x300   : > { %3542 = vmatmul.mubr.msk.f32.gmra.mrb[54].mxu1 %vm404_vm1, %v3075_v57 }
 0x380   : > { %v1946_v48 = vpop.f32.mrb[16].mxu1 }
 0x381   : > { %v1948_v2 = vpop.f32.mrb[17].mxu1  ;;  %v1969_v4 = vmul.f32 %v5091_v38, %v1946_v48 }
 0x382   : > { %v1970_v1 = vmul.f32 %v5098_v41, %v1948_v2 }
 0x384   : > { %v1952_v5 = vpop.f32.mrb[18].mxu1 }
 0x385   : > { %v1954_v35 = vpop.f32.mrb[19].mxu1  ;;  %v1971_v16 = vmul.f32 %v5091_v38, %v1952_v5 }
 0x386   : > { %v1972_v24 = vmul.f32 %v5098_v41, %v1954_v35 }
 0x388   : > { %v1958_v23 = vpop.f32.mrb[20].mxu1 }
 0x389   : > { %v1960_v37 = vpop.f32.mrb[21].mxu1  ;;  %v1973_v6 = vmul.f32 %v5091_v38, %v1958_v23 }
 0x38a   : > { %v1974_v58 = vmul.f32 %v5098_v41, %v1960_v37 }
 0x38c   : > { %v1964_v61 = vpop.f32.mrb[22].mxu1 }
 0x38d   : > { %v1966_v62 = vpop.f32.mrb[23].mxu1  ;;  %v1975_v22 = vmul.f32 %v5091_v38, %v1964_v61 }
 0x38e   : > { %v1976_v10 = vmul.f32 %v5098_v41, %v1966_v62 }
 0x394   : > { %v2254_v63 = vpop.f32.mrb[24].mxu1 }
 0x395   : > { %v2277_v12 = vmul.f32 %v5094_v39, %v2254_v63  ;;  %v2256_v11 = vpop.f32.mrb[25].mxu1 }
 0x396   : > { %v2278_v60 = vmul.f32 %v5101_v42, %v2256_v11 }
 0x397   : > { %v3734_v13 = vadd.f32 %v2277_v12, %v1969_v4 }
 0x398   : > { %v3739_v25 = vadd.f32 %v2278_v60, %v1970_v1  ;;  %v2260_v14 = vpop.f32.mrb[26].mxu1 }
 0x399   : > { %v2279_v3 = vmul.f32 %v5094_v39, %v2260_v14  ;;  %v2262_v17 = vpop.f32.mrb[27].mxu1 }
 0x39a   : > { %v2280_v50 = vmul.f32 %v5101_v42, %v2262_v17 }
 0x39b   : > { %v3744_v59 = vadd.f32 %v2279_v3, %v1971_v16 }
 0x39c   : > { %v3749_v7 = vadd.f32 %v2280_v50, %v1972_v24  ;;  %v2266_v20 = vpop.f32.mrb[28].mxu1 }
 0x39d   : > { %v2281_v26 = vmul.f32 %v5094_v39, %v2266_v20  ;;  %v2268_v45 = vpop.f32.mrb[29].mxu1 }
 0x39e   : > { %v2282_v8 = vmul.f32 %v5101_v42, %v2268_v45 }
 0x39f   : > { %v3754_v15 = vadd.f32 %v2281_v26, %v1973_v6 }
 0x3a0   : > { %v3759_v19 = vadd.f32 %v2282_v8, %v1974_v58  ;;  %v2272_v9 = vpop.f32.mrb[30].mxu1 }
 0x3a1   : > { %v2283_v27 = vmul.f32 %v5094_v39, %v2272_v9  ;;  %v2416_v28 = vpop.f32.mrb[48].mxu0  ;;  %v2274_v29 = vpop.f32.mrb[31].mxu1 }
 0x3a2   : > { %v2439_v18 = vmul.f32 %v5091_v38, %v2416_v28  ;;  %v2284_v21 = vmul.f32 %v5101_v42, %v2274_v29  ;;  %v2418_v30 = vpop.f32.mrb[49].mxu0 }
 0x3a3   : > { %v3764_v31 = vadd.f32 %v2283_v27, %v1975_v22  ;;  %v2440_v32 = vmul.f32 %v5098_v41, %v2418_v30 }
 0x3a4   : > { %v3735_v0 = vadd.f32 %v3734_v13, %v2439_v18  ;;  %v3769_v34 = vadd.f32 %v2284_v21, %v1976_v10  ;;  %v2716_v36 = vpop.f32.mrb[32].mxu1 }
 0x3a5   : > { %v3740_v40 = vadd.f32 %v3739_v25, %v2440_v32  ;;  %v2422_v43 = vpop.f32.mrb[50].mxu0  ;;  %v2739_v33 = vmul.f32 %v5094_v39, %v2716_v36  ;;  %v2718_v44 = vpop.f32.mrb[33].mxu1 }
 0x3a6   : > { %v2441_v46 = vmul.f32 %v5091_v38, %v2422_v43  ;;  %v2424_v47 = vpop.f32.mrb[51].mxu0  ;;  %v2740_v49 = vmul.f32 %v5101_v42, %v2718_v44 }
 0x3a7   : > { %v3736_v51 = vadd.f32 %v3735_v0, %v2739_v33  ;;  %v2442_v52 = vmul.f32 %v5098_v41, %v2424_v47 }
 0x3a8   : > { %v3745_v53 = vadd.f32 %v3744_v59, %v2441_v46  ;;  %v3741_v54 = vadd.f32 %v3740_v40, %v2740_v49  ;;  %v2722_v55 = vpop.f32.mrb[34].mxu1 }
 0x3a9   : > { %v3750_v56 = vadd.f32 %v3749_v7, %v2442_v52  ;;  %v2428_v57 = vpop.f32.mrb[52].mxu0  ;;  %v2741_v48 = vmul.f32 %v5094_v39, %v2722_v55  ;;  %v2724_v2 = vpop.f32.mrb[35].mxu1 }
 0x3aa   : > { %v2443_v5 = vmul.f32 %v5091_v38, %v2428_v57  ;;  %v2430_v35 = vpop.f32.mrb[53].mxu0  ;;  %v2742_v23 = vmul.f32 %v5101_v42, %v2724_v2 }
 0x3ab   : > { %v3746_v37 = vadd.f32 %v3745_v53, %v2741_v48  ;;  %v2444_v61 = vmul.f32 %v5098_v41, %v2430_v35 }
 0x3ac   : > { %v3755_v62 = vadd.f32 %v3754_v15, %v2443_v5  ;;  %v3751_v63 = vadd.f32 %v3750_v56, %v2742_v23  ;;  %v2728_v4 = vpop.f32.mrb[36].mxu1 }
 0x3ad   : > { %v3760_v12 = vadd.f32 %v3759_v19, %v2444_v61  ;;  %v2434_v11 = vpop.f32.mrb[54].mxu0  ;;  %v2743_v1 = vmul.f32 %v5094_v39, %v2728_v4  ;;  %v2730_v60 = vpop.f32.mrb[37].mxu1 }
 0x3ae   : > { %v2445_v13 = vmul.f32 %v5091_v38, %v2434_v11  ;;  %v2436_v25 = vpop.f32.mrb[55].mxu0  ;;  %v2744_v14 = vmul.f32 %v5101_v42, %v2730_v60 }
 0x3af   : > { %v3756_v16 = vadd.f32 %v3755_v62, %v2743_v1  ;;  %v2446_v3 = vmul.f32 %v5098_v41, %v2436_v25 }
 0x3b0   : > { %v3765_v17 = vadd.f32 %v3764_v31, %v2445_v13  ;;  %v3761_v24 = vadd.f32 %v3760_v12, %v2744_v14  ;;  %v2734_v50 = vpop.f32.mrb[38].mxu1 }
 0x3b1   : > { %v3770_v59 = vadd.f32 %v3769_v34, %v2446_v3  ;;  %v2745_v7 = vmul.f32 %v5094_v39, %v2734_v50  ;;  %v2736_v20 = vpop.f32.mrb[39].mxu1 }
 0x3b2   : > { %v2746_v6 = vmul.f32 %v5101_v42, %v2736_v20 }
 0x3b3   : > { %v3766_v26 = vadd.f32 %v3765_v17, %v2745_v7 }
 0x3b4   : > { %v3771_v45 = vadd.f32 %v3770_v59, %v2746_v6  ;;  %v2878_v58 = vpop.f32.mrb[40].mxu1 }
 0x3b5   : > { %v2901_v8 = vmul.f32 %v5091_v38, %v2878_v58  ;;  %v2880_v15 = vpop.f32.mrb[41].mxu1 }
 0x3b6   : > { %v2902_v19 = vmul.f32 %v5098_v41, %v2880_v15 }
 0x3b7   : > { %v3737_v9 = vadd.f32 %v3736_v51, %v2901_v8 }
 0x3b8   : > { %v2884_v22 = vpop.f32.mrb[42].mxu1  ;;  %v3742_v27 = vadd.f32 %v3741_v54, %v2902_v19 }
 0x3b9   : > { %v2903_v28 = vmul.f32 %v5091_v38, %v2884_v22  ;;  %v2886_v29 = vpop.f32.mrb[43].mxu1 }
 0x3ba   : > { %v2904_v10 = vmul.f32 %v5098_v41, %v2886_v29 }
 0x3bb   : > { %v3747_v18 = vadd.f32 %v3746_v37, %v2903_v28 }
 0x3bc   : > { %v2890_v21 = vpop.f32.mrb[44].mxu1  ;;  %v3752_v30 = vadd.f32 %v3751_v63, %v2904_v10  ;;  %v3250_v10 = vld [vmem:[%s5591_s3] sm:$0xff] }
 0x3bd   : > { %v2905_v31 = vmul.f32 %v5091_v38, %v2890_v21  ;;  %v2892_v32 = vpop.f32.mrb[45].mxu1  ;;  %v3252_v21 = vld [vmem:[%s5591_s3 + $0x10] sm:$0xff] }
 0x3be   : > { %v2906_v0 = vmul.f32 %v5098_v41, %v2892_v32 }
 0x3bf   : > { %v3757_v34 = vadd.f32 %v3756_v16, %v2905_v31 }
 0x3c0   : > { %v2896_v36 = vpop.f32.mrb[46].mxu1  ;;  %v3762_v40 = vadd.f32 %v3761_v24, %v2906_v0 }
 0x3c1   : > { %v2907_v43 = vmul.f32 %v5091_v38, %v2896_v36  ;;  %v2898_v33 = vpop.f32.mrb[47].mxu1  ;;  %v3253_v36 = vld [vmem:[%s5591_s3 + $0x18] sm:$0xff] }
 0x3c2   : > { %v2908_v44 = vmul.f32 %v5098_v41, %v2898_v33 }
 0x3c3   : > { %v3040_v46 = vpop.f32.mrb[40].mxu0  ;;  %v3767_v47 = vadd.f32 %v3766_v26, %v2907_v43 }
 0x3c4   : > { %v3738_v49 = vadd.f32 %v3737_v9, %v3040_v46  ;;  %v3042_v51 = vpop.f32.mrb[41].mxu0  ;;  %v3772_v52 = vadd.f32 %v3771_v45, %v2908_v44 }
 0x3c5   : > { %v3743_v53 = vadd.f32 %v3742_v27, %v3042_v51 }
 0x3c7   : > { %v3046_v54 = vpop.f32.mrb[42].mxu0  ;;  %v3194_v55 = vpop.f32.mrb[48].mxu1 }
 0x3c8   : > { %v3748_v56 = vadd.f32 %v3747_v18, %v3046_v54  ;;  %v3217_v57 = vmul.f32 %v5094_v39, %v3194_v55  ;;  %v3048_v48 = vpop.f32.mrb[43].mxu0  ;;  %v3196_v2 = vpop.f32.mrb[49].mxu1 }
 0x3c9   : > { %v3753_v5 = vadd.f32 %v3752_v30, %v3048_v48  ;;  %v3218_v35 = vmul.f32 %v5101_v42, %v3196_v2  ;;  %v3273_v2 = vld [vmem:[%s5592_s4 + $0x8] sm:$0xff] }
 0x3ca   : > { %v5458_v38 = vadd.f32 %v3738_v49, %v3217_v57 }
 0x3cb   : > { %v5460_v23 = vadd.f32 %v3743_v53, %v3218_v35  ;;  %v3052_v41 = vpop.f32.mrb[44].mxu0  ;;  %v3200_v37 = vpop.f32.mrb[50].mxu1 }
 0x3cc   : > { %v3758_v61 = vadd.f32 %v3757_v34, %v3052_v41  ;;  %v3219_v62 = vmul.f32 %v5094_v39, %v3200_v37  ;;  %v3054_v63 = vpop.f32.mrb[45].mxu0  ;;  %v3202_v4 = vpop.f32.mrb[51].mxu1  ;;  %v3275_v41 = vld [vmem:[%s5592_s4 + $0x18] sm:$0xff]  ;;  %v3274_v37 = vld [vmem:[%s5592_s4 + $0x10] sm:$0xff] }
 0x3cd   : > { %v3763_v12 = vadd.f32 %v3762_v40, %v3054_v63  ;;  %v3220_v11 = vmul.f32 %v5101_v42, %v3202_v4  ;;  %v3233_v1 = vadd.f32 %v5460_v23, %v5458_v38 }
 0x3ce   : > { %v5466_v60 = vadd.f32 %v3748_v56, %v3219_v62 }
 0x3cf   : > { %v5468_v13 = vadd.f32 %v3753_v5, %v3220_v11  ;;  %v3206_v25 = vpop.f32.mrb[52].mxu1  ;;  %3234 = vadd.xlane.f32.xlu0 %v3233_v1  ;;  %v3058_v14 = vpop.f32.mrb[46].mxu0  ;;  %v3272_v5 = vld [vmem:[%s5592_s4] sm:$0xff] }
 0x3d0   : > { %v3221_v16 = vmul.f32 %v5094_v39, %v3206_v25  ;;  %v3768_v3 = vadd.f32 %v3767_v47, %v3058_v14  ;;  %v3060_v17 = vpop.f32.mrb[47].mxu0  ;;  %v3208_v24 = vpop.f32.mrb[53].mxu1 }
 0x3d1   : > { %v3773_v50 = vadd.f32 %v3772_v52, %v3060_v17  ;;  %v3222_v59 = vmul.f32 %v5101_v42, %v3208_v24  ;;  %v3236_v7 = vadd.f32 %v5468_v13, %v5466_v60 }
 0x3d2   : > { %v5474_v20 = vadd.f32 %v3758_v61, %v3221_v16 }
 0x3d3   : > { %v5476_v6 = vadd.f32 %v3763_v12, %v3222_v59  ;;  %v3212_v26 = vpop.f32.mrb[54].mxu1  ;;  %3237 = vadd.xlane.f32.xlu1 %v3236_v7 }
 0x3d4   : > { %v3223_v45 = vmul.f32 %v5094_v39, %v3212_v26  ;;  %v3214_v58 = vpop.f32.mrb[55].mxu1  ;;  %v3251_v39 = vld [vmem:[%s5591_s3 + $0x8] sm:$0xff] }
 0x3d5   : > { %v3224_v8 = vmul.f32 %v5101_v42, %v3214_v58  ;;  %v3239_v15 = vadd.f32 %v5476_v6, %v5474_v20 }
 0x3d6   : > { %v5482_v19 = vadd.f32 %v3768_v3, %v3223_v45 }
 0x3d7   : > { %v5484_v9 = vadd.f32 %v3773_v50, %v3224_v8  ;;  %3240 = vadd.xlane.f32.xlu0 %v3239_v15 }
 0x3d9   : > { %v3242_v22 = vadd.f32 %v5484_v9, %v5482_v19 }
 0x3db   : > { %3243 = vadd.xlane.f32.xlu0 %v3242_v22 }
 0x45c   : > { %v3235_v27 = vpop.xlane.xlu0 %3234 }
 0x45d   : > { %v3246_v29 = vmul.f32 0.00390625, %v3235_v27 }
 0x45f   : > { %v3254_v31 = vmul.f32 %v3250_v10, %v3246_v29 }
 0x460   : > { %v3238_v28 = vpop.xlane.xlu1 %3237 }
 0x461   : > { %v3247_v42 = vmul.f32 0.00390625, %v3238_v28  ;;  %v3258_v43 = vsel %vm860_vm3, %v3254_v31, 0.0 }
 0x463   : > { %v3255_v18 = vmul.f32 %v3251_v39, %v3247_v42 }
 0x464   : > { %v3241_v30 = vpop.xlane.xlu0 %3240 }
 0x465   : > { %v3248_v32 = vmul.f32 0.00390625, %v3241_v30  ;;  %v3259_v0 = vsel %vm860_vm3, %v3255_v18, 0.0  ;;  %v3327_v30 = vld [vmem:[%s4771_s6 + $0x18] sm:$0xff] }
 0x466   : > { %v3260_v46 = vadd.f32 %v3259_v0, %v3258_v43 }
 0x467   : > { %v3256_v34 = vmul.f32 %v3252_v21, %v3248_v32  ;;  %v3326_v21 = vld [vmem:[%s4771_s6 + $0x10] sm:$0xff] }
 0x468   : > { %v3244_v40 = vpop.xlane.xlu0 %3243 }
 0x469   : > { %v3261_v33 = vsel %vm860_vm3, %v3256_v34, 0.0  ;;  %v3249_v44 = vmul.f32 0.00390625, %v3244_v40  ;;  %v3324_v34 = vld [vmem:[%s4771_s6] sm:$0xff] }
 0x46a   : > { %v3262_v49 = vadd.f32 %v3261_v33, %v3260_v46 }
 0x46b   : > { %v3257_v47 = vmul.f32 %v3253_v36, %v3249_v44  ;;  %v3325_v36 = vld [vmem:[%s4771_s6 + $0x8] sm:$0xff] }
 0x46d   : > { %v3263_v51 = vsel %vm860_vm3, %v3257_v47, 0.0 }
 0x46e   : > { %v3264_v52 = vadd.f32 %v3263_v51, %v3262_v49  ;;  %v3330_v51 = vld [vmem:[%s4771_s6 + $0x30] sm:$0xff] }
 0x470   : > { %v3265_v53 = vrot.slane %v3264_v52, 4 }
 0x472   : > { %v3266_v54 = vadd.f32 %v3265_v53, %v3264_v52  ;;  %v3331_v52 = vld [vmem:[%s4771_s6 + $0x38] sm:$0xff]  ;;  %v3329_v53 = vld [vmem:[%s4771_s6 + $0x28] sm:$0xff] }
 0x474   : > { %v3267_v55 = vrot.slane %v3266_v54, 2 }
 0x476   : > { %v3268_v56 = vadd.f32 %v3267_v55, %v3266_v54 }
 0x478   : > { %v3269_v57 = vrot.slane %v3268_v56, 1 }
 0x47a   : > { %v3270_v48 = vadd.f32 %v3269_v57, %v3268_v56 }
 0x47c   : > { %v3271_v35 = vmax.f32 %v3270_v48, 0.0 }
 0x47e   : > { %v3277_v61 = vmul.f32 %v3273_v2, %v3271_v35  ;;  %v3276_v62 = vmul.f32 %v3272_v5, %v3271_v35  ;;  %v3279_v12 = vmul.f32 %v3275_v41, %v3271_v35  ;;  %v3278_v11 = vmul.f32 %v3274_v37, %v3271_v35 }
 0x480   : > { %v3283_v63 = vsel %vm860_vm3, %v3277_v61, 0.0  ;;  %v3280_v4 = vsel %vm860_vm3, %v3276_v62, 0.0  ;;  %v3289_v1 = vsel %vm860_vm3, %v3279_v12, 0.0  ;;  %v3286_v25 = vsel %vm860_vm3, %v3278_v11, 0.0 }
 0x481   : > { %3284 = vadd.xlane.f32.xlu0 %v3283_v63  ;;  %3281 = vadd.xlane.f32.xlu1 %v3280_v4 }
 0x485   : > { %3290 = vadd.xlane.f32.xlu0 %v3289_v1  ;;  %3287 = vadd.xlane.f32.xlu1 %v3286_v25 }
 0x50e   : > { %v3285_v14 = vpop.xlane.xlu0 %3284  ;;  %v3282_v16 = vpop.xlane.xlu1 %3281 }
 0x50f   : > { %v3293_v3 = vsub.f32 0.0, %v3285_v14  ;;  %v3292_v17 = vsub.f32 0.0, %v3282_v16 }
 0x511   : > { %v3298_v24 = vmul.f32 1.442695, %v3293_v3  ;;  %v3296_v50 = vmul.f32 1.442695, %v3292_v17 }
 0x512   : > { %v3291_v59 = vpop.xlane.xlu0 %3290  ;;  %v3288_v7 = vpop.xlane.xlu1 %3287 }
 0x513   : > { %4368 = vpow2.f32 %v3298_v24  ;;  %v3295_v26 = vsub.f32 0.0, %v3291_v59  ;;  %v3294_v45 = vsub.f32 0.0, %v3288_v7 }
 0x514   : > { %4370 = vpow2.f32 %v3296_v50 }
 0x515   : > { %v3302_v58 = vmul.f32 1.442695, %v3295_v26  ;;  %v3300_v8 = vmul.f32 1.442695, %v3294_v45 }
 0x517   : > { %4372 = vpow2.f32 %v3302_v58 }
 0x518   : > { %4374 = vpow2.f32 %v3300_v8 }
 0x51d   : > { %v4369_v15 = vpop.eup %4368 }
 0x51e   : > { %v4371_v22 = vpop.eup %4370  ;;  %v3305_v27 = vadd.f32 1.0, %v4369_v15 }
 0x51f   : > { %v3304_v39 = vadd.f32 1.0, %v4371_v22 }
 0x520   : > { %4376 = vrcp.f32 %v3305_v27 }
 0x521   : > { %v4373_v28 = vpop.eup %4372  ;;  %4378 = vrcp.f32 %v3304_v39 }
 0x522   : > { %v4375_v29 = vpop.eup %4374  ;;  %v3307_v42 = vadd.f32 1.0, %v4373_v28 }
 0x523   : > { %v3306_v10 = vadd.f32 1.0, %v4375_v29 }
 0x524   : > { %4380 = vrcp.f32 %v3307_v42 }
 0x525   : > { %4382 = vrcp.f32 %v3306_v10 }
 0x52a   : > { %v4377_v18 = vpop.eup %4376 }
 0x52b   : > { %v4379_v31 = vpop.eup %4378  ;;  %v3318_v32 = vmul.f32 %v4377_v18, %v5466_v60  ;;  %v3319_v0 = vmul.f32 %v4377_v18, %v5468_v13  ;;  %v3328_v13 = vld [vmem:[%s4771_s6 + $0x20] sm:$0xff]  ;;  %s3349_s6 = scalar_lea.sflag [#allocation6], %s4765_s29 }
 0x52c   : > { %v3316_v40 = vmul.f32 %v4379_v31, %v5458_v38  ;;  %v3317_v43 = vmul.f32 %v4379_v31, %v5460_v23 }
 0x52d   : > { %v3334_v33 = vadd.f32 %v3326_v21, %v3318_v32  ;;  %v3335_v44 = vadd.f32 %v3327_v30, %v3319_v0 }
 0x52e   : > { %v4381_v46 = vpop.eup %4380  ;;  %v3332_v47 = vadd.f32 %v3324_v34, %v3316_v40  ;;  %v3333_v49 = vadd.f32 %v3325_v36, %v3317_v43 }
 0x52f   : > { %v4383_v60 = vpop.eup %4382  ;;  %3342 = vst [vmem:[%s271_s7 + $0x10] sm:$0xff] %v3334_v33  ;;  %3343 = vst [vmem:[%s271_s7 + $0x18] sm:$0xff] %v3335_v44  ;;  %v3322_v38 = vmul.f32 %v4381_v46, %v5482_v19  ;;  %v3323_v23 = vmul.f32 %v4381_v46, %v5484_v9 }
 0x530   : > { %3340 = vst [vmem:[%s271_s7] sm:$0xff] %v3332_v47  ;;  %3341 = vst [vmem:[%s271_s7 + $0x8] sm:$0xff] %v3333_v49  ;;  %v3320_v54 = vmul.f32 %v4383_v60, %v5474_v20  ;;  %v3321_v55 = vmul.f32 %v4383_v60, %v5476_v6 }
 0x531   : > { %v3338_v56 = vadd.f32 %v3330_v51, %v3322_v38  ;;  %v3339_v57 = vadd.f32 %v3331_v52, %v3323_v23 }
 0x532   : > { %v3336_v19 = vadd.f32 %v3328_v13, %v3320_v54  ;;  %v3337_v9 = vadd.f32 %v3329_v53, %v3321_v55 }
 0x533   : > { %3346 = vst [vmem:[%s271_s7 + $0x30] sm:$0xff] %v3338_v56  ;;  %3347 = vst [vmem:[%s271_s7 + $0x38] sm:$0xff] %v3339_v57 }
 0x534   : > { %3344 = vst [vmem:[%s271_s7 + $0x20] sm:$0xff] %v3336_v19  ;;  %3345 = vst [vmem:[%s271_s7 + $0x28] sm:$0xff] %v3337_v9 }
 0x535   : > { %4485 = shalt.err (!%p4482_p2)
}
 0x536   : > { %s4486_s30 = scalar_lea.hbm %s5542_s26, 1024  ;;  %s4490_s9 = scalar_lea.hbm %s5593_s5, 2048 }
 0x537   : > { %p4487_p13 = scmp.ne.s32.totalorder %s5542_s26, %s4486_s30  ;;  %p4491_p4 = scmp.lt.u32.totalorder %s5542_s26, %s5593_s5 }
 0x538   : > { %p4492_p5 = scmp.lt.u32.totalorder %s4490_s9, %s4486_s30  ;;  %p4494_p11 = scmp.lt.u32.totalorder %s4486_s30, %s5542_s26 }
 0x539   : > { %p4488_p6 = pnand %p4487_p13, %p5607_p0 }
 0x53a   : > { %p4493_p8 = por %p4492_p5, %p4491_p4 }
 0x53b   : > { %p4489_p10 = pneg %p4488_p6 }
 0x53c   : > { %p4495_p1 = por %p4494_p11, %p4493_p8 }
 0x53e   : > { %p4496_p3 = pnand %p4495_p1, %p4489_p10 }
 0x540   : > { %4499 = shalt.err (!%p4496_p3)
}
 0x541   : > { %s4561_s7 = smov 256   ;;  %s4562_s22 = smov 16  }
 0x542   : > { %3816 = dma.vmem_to_hbm [thread:$0]  (%p5607_p0), %s5544_s24, 1024, %s5542_s26, %s3349_s6, %s4561_s7, %s4561_s7, %s4562_s22  }
 0x543 PF: > { %s3377_s17 = sand.u32 1, %s4530_s18   ;;  %p5608_p7 = scmp.ne.s32.totalorder %s5598_s25, 0 }
 0x544   : > { %p5609_p9 = scmp.ge.s32.totalorder %s4542_s21, 2  ;;  %s3378_s8 = scalar_lea.sflag [#allocation6], %s3377_s17 }
 0x546   : > { %p3830_p12 = pnand %p5609_p9, %p5608_p7 }
 0x548   : > { %4525 = dma.done.wait (!%p3830_p12), %s3378_s8, 1024  }
 0x549   : > { %4527 = vsyncadd (!%p3830_p12), %s3378_s8, 4294966272  ;;  %p19_p2 = scmp.ge.s32.totalorder %s4703_s14, 4   ;;  %s5610_s18 = smov %s4534_s19 }
 0x54a   : > { %s5611_s19 = smov %s4538_s20  ;;  %s5612_s20 = smov %s4719_s27 }
 0x54b   : > { %s5613_s21 = smov %s4703_s14  ;;  %21 = sbr.rel (!%p19_p2) target bundleno = 6 (0x6), region = 109 }
 0x552   :  { %3383 = vsyncpa [#allocation5], 1 }
 0x553   :  { %3385 = vsyncpa [#allocation5 + $0x1], 1 }
 0x554   :  { %3386 = vsyncpa [#allocation8], 1 }
 0x555   :  { %3387 = vsyncpa [#allocation6], 1 }
 0x556   :  { %3389 = vsyncpa [#allocation6 + $0x1], 1 }

</bundles_post_ra>
